<compile_context>
chip_gen: v7x
topology: tpu7x:2x2x1
jax: 0.10.0
libtpu: 0.0.40
codegen_flags: <defaults>
</compile_context>

<pallas_src>
import jax
import jax.numpy as jnp
from jax.experimental import pallas as pl
from jax.experimental.pallas import tpu as pltpu


def _round_up(v, m):
    return (v + m - 1) // m * m


def lr_forward(x, aug, params, *, row_tile=1024):
    """Pallas implementation of LR.forward(x, aug, param).

    x:   (N, n_input) float32
    aug: (N, n_out_aug) float32
    params: dict with PyTorch-style 'mlp.linearK.weight' (out, in) / '.bias'.
    Returns (N, n_output) float32.
    """
    n, n_input = x.shape
    n_aug = aug.shape[1]
    h0 = params['mlp.linear1.weight'].shape[0]
    h1 = params['mlp.linear2.weight'].shape[0]
    h2 = params['mlp.linear3.weight'].shape[0]
    h3 = params['mlp.linear4.weight'].shape[0]
    n_output = params['mlp.linear5.weight'].shape[0]
    assert params['mlp.linear2.weight'].shape[1] == h0 + n_aug

    # ---- tile selection: big tiles amortize per-step overhead; try to keep
    # at least two grid steps so both v7x TensorCores are used. -------------
    tile = min(row_tile, max(128, _round_up(pl.cdiv(n, 2), 128)))
    n_pad = _round_up(n, tile)
    grid = (n_pad // tile,)

    # ---- present activations pre-transposed (batch on lanes), zero-padded --
    def pad_t(a):  # (N, F) -> (F, n_pad)
        at = a.T.astype(jnp.float32)
        return jnp.pad(at, ((0, 0), (0, n_pad - a.shape[0])))

    x_t = pad_t(x)       # (n_input, n_pad)
    aug_t = pad_t(aug)   # (n_aug,   n_pad)

    # ---- pack the 5 weights into one padded slab and the 5 biases into one -
    H = max(h0, h1, h2, h3, n_output)
    IN = max(n_input, h0 + n_aug, h1, h2, h3, n_output)
    w_slab = jnp.zeros((5, H, IN), jnp.float32)
    w_slab = w_slab.at[0, :h0, :n_input].set(params['mlp.linear1.weight'])
    w_slab = w_slab.at[1, :h1, :h0 + n_aug].set(params['mlp.linear2.weight'])
    w_slab = w_slab.at[2, :h2, :h1].set(params['mlp.linear3.weight'])
    w_slab = w_slab.at[3, :h3, :h2].set(params['mlp.linear4.weight'])
    # linear5 stored transposed: (h3, n_output) -> multiply + sublane reduce.
    w_slab = w_slab.at[4, :h3, :n_output].set(params['mlp.linear5.weight'].T)

    b_slab = jnp.zeros((H, 5), jnp.float32)
    b_slab = b_slab.at[:h0, 0].set(params['mlp.linear1.bias'])
    b_slab = b_slab.at[:h1, 1].set(params['mlp.linear2.bias'])
    b_slab = b_slab.at[:h2, 2].set(params['mlp.linear3.bias'])
    b_slab = b_slab.at[:h3, 3].set(params['mlp.linear4.bias'])
    b_slab = b_slab.at[:n_output, 4].set(params['mlp.linear5.bias'])

    # ---- kernel (closes over the static layer dims) ------------------------
    def _lr_kernel(xt_ref, augt_ref, w_ref, b_ref, o_ref):
        xt = xt_ref[...]       # (n_input, tile)
        augt = augt_ref[...]   # (n_aug,   tile)

        # linear1 + relu: K = n_input is tiny -> outer-product on the VPU,
        # keeps the first layer off the serialized MXU chain.
        w1 = w_ref[0, :h0, :n_input]                 # (h0, n_input)
        h = w1[:, 0:1] * xt[0:1, :]                  # (h0, tile)
        for k in range(1, n_input):
            h = h + w1[:, k:k + 1] * xt[k:k + 1, :]
        h = jnp.maximum(h + b_ref[:h0, 0:1], 0.0)

        # linear2 + relu:  cat([h, aug]) @ W2^T  ==  W2a @ h + W2b @ aug
        h = (jnp.dot(w_ref[1, :h1, :h0], h, preferred_element_type=jnp.float32)
             + jnp.dot(w_ref[1, :h1, h0:h0 + n_aug], augt,
                       preferred_element_type=jnp.float32)
             + b_ref[:h1, 1:2])
        h = jnp.maximum(h, 0.0)

        # linear3 + relu
        h = jnp.maximum(
            jnp.dot(w_ref[2, :h2, :h1], h, preferred_element_type=jnp.float32)
            + b_ref[:h2, 2:3], 0.0)

        # linear4 + relu
        h = jnp.maximum(
            jnp.dot(w_ref[3, :h3, :h2], h, preferred_element_type=jnp.float32)
            + b_ref[:h3, 3:4], 0.0)

        # linear5 (no activation).  out = 1 -> multiply + sublane reduce (XLU).
        w5t = w_ref[4, :h3, :n_output]               # (h3, n_output)
        if n_output == 1:
            out = jnp.sum(w5t * h, axis=0, keepdims=True)          # (1, tile)
        else:
            out = jax.lax.dot_general(
                w5t, h, (((0,), (0,)), ((), ())),
                preferred_element_type=jnp.float32)                # (n_out, tile)
        o_ref[...] = (out + b_ref[:n_output, 4:5]).astype(o_ref.dtype)

    in_specs = [
        pl.BlockSpec((n_input, tile), lambda i: (0, i)),   # x^T   (lane-dense)
        pl.BlockSpec((n_aug, tile), lambda i: (0, i)),     # aug^T (lane-dense)
        pl.BlockSpec((5, H, IN), lambda i: (0, 0, 0)),     # packed weights
        pl.BlockSpec((H, 5), lambda i: (0, 0)),            # packed biases
    ]
    out_specs = pl.BlockSpec((n_output, tile), lambda i: (0, i))

    out_t = pl.pallas_call(
        _lr_kernel,
        out_shape=jax.ShapeDtypeStruct((n_output, n_pad), jnp.float32),
        grid_spec=pltpu.PrefetchScalarGridSpec(
            num_scalar_prefetch=0,
            grid=grid,
            in_specs=in_specs,
            out_specs=out_specs,
        ),
        compiler_params=pltpu.CompilerParams(
            dimension_semantics=("parallel",)),
    )(x_t, aug_t, w_slab, b_slab)

    # back to the PyTorch layout; drop padded columns.
    return out_t.T[:n]


def init_lr_params(key, n_input, n_h, n_output, n_out_aug):
    """Deterministic kaiming_normal_(mode='fan_in') weights, zero biases."""
    dims_in = [n_input, n_h[0] + n_out_aug, n_h[1], n_h[2], n_h[3]]
    dims_out = [n_h[0], n_h[1], n_h[2], n_h[3], n_output]
    params = {}
    keys = jax.random.split(key, 5)
    for idx, (k, fin, fout) in enumerate(zip(keys, dims_in, dims_out), start=1):
        std = (2.0 / fin) ** 0.5                      # gain sqrt(2) / sqrt(fan_in)
        params[f'mlp.linear{idx}.weight'] = (
            std * jax.random.normal(k, (fout, fin), dtype=jnp.float32))
        params[f'mlp.linear{idx}.bias'] = jnp.zeros((fout,), dtype=jnp.float32)
    return params


def _reference_forward(x, aug, params):
    """Pure-JAX reference replicating linear_block exactly."""
    def lin(h, i):
        return h @ params[f'mlp.linear{i}.weight'].T + params[f'mlp.linear{i}.bias']
    h = jax.nn.relu(lin(x, 1))
    h = jnp.concatenate([h, aug], axis=-1)
    h = jax.nn.relu(lin(h, 2))
    h = jax.nn.relu(lin(h, 3))
    h = jax.nn.relu(lin(h, 4))
    return lin(h, 5)


if __name__ == "__main__":
    # Image-completion-style shapes: 2-D pixel coords -> 1 grey value.
    # N = 2048 query points (e.g. two 32x32 images worth of pixels) -> two
    # parallel grid steps with the default 1024-row tile.
    n_input, n_out_aug, n_output = 2, 16, 1
    n_h = [32, 32, 32, 32]
    N = 2048

    key = jax.random.PRNGKey(0)
    kp, kx, ka = jax.random.split(key, 3)
    params = init_lr_params(kp, n_input, n_h, n_output, n_out_aug)
    x = jax.random.uniform(kx, (N, n_input), dtype=jnp.float32)
    aug = jax.random.normal(ka, (N, n_out_aug), dtype=jnp.float32)

    y = lr_forward(x, aug, params)
    y = jax.block_until_ready(y)

    y_ref = _reference_forward(x, aug, params)
    assert y.shape == (N, n_output)
    assert jnp.allclose(y, y_ref, atol=1e-4, rtol=1e-4), "mismatch vs reference"

    print("KERNEL_OK")
</pallas_src>

<mosaic_0001>
module attributes {stable_mosaic.version = 11 : i64} {
  func.func @_lr_kernel(%arg0: i32, %arg1: memref<2x1024xf32, #tpu.memory_space<vmem>>, %arg2: memref<16x1024xf32, #tpu.memory_space<vmem>>, %arg3: memref<5x32x48xf32, #tpu.memory_space<vmem>>, %arg4: memref<32x5xf32, #tpu.memory_space<vmem>>, %arg5: memref<1x1024xf32, #tpu.memory_space<vmem>>) attributes {dimension_semantics = [#tpu.dimension_semantics<parallel>], iteration_bounds = array<i64: 2>, scalar_prefetch = 0 : i64, scratch_operands = 0 : i64, tpu.core_type = #tpu.core_type<tc>, window_params = [{transform_indices = @transform_0, window_bounds = array<i64: 2, 1024>}, {transform_indices = @transform_1, window_bounds = array<i64: 16, 1024>}, {pipeline_mode = #tpu.pipeline_mode<synchronous>, transform_indices = @transform_2, window_bounds = array<i64: 5, 32, 48>}, {pipeline_mode = #tpu.pipeline_mode<synchronous>, transform_indices = @transform_3, window_bounds = array<i64: 32, 5>}, {transform_indices = @transform_4, window_bounds = array<i64: 1, 1024>}]} {
    %c0 = arith.constant 0 : index
    %c0_0 = arith.constant 0 : index
    %0 = vector.load %arg1[%c0, %c0_0] : memref<2x1024xf32, #tpu.memory_space<vmem>>, vector<2x1024xf32>
    %c0_1 = arith.constant 0 : index
    %c0_2 = arith.constant 0 : index
    %1 = vector.load %arg2[%c0_1, %c0_2] : memref<16x1024xf32, #tpu.memory_space<vmem>>, vector<16x1024xf32>
    %c0_3 = arith.constant 0 : index
    %c0_4 = arith.constant 0 : index
    %c0_5 = arith.constant 0 : index
    %2 = vector.load %arg3[%c0_3, %c0_4, %c0_5] : memref<5x32x48xf32, #tpu.memory_space<vmem>>, vector<1x32x2xf32>
    %3 = vector.shape_cast %2 : vector<1x32x2xf32> to vector<32x2xf32>
    %4 = vector.extract_strided_slice %3 {offsets = [0, 0], sizes = [32, 1], strides = [1, 1]} : vector<32x2xf32> to vector<32x1xf32>
    %5 = vector.extract_strided_slice %0 {offsets = [0, 0], sizes = [1, 1024], strides = [1, 1]} : vector<2x1024xf32> to vector<1x1024xf32>
    %6 = vector.broadcast %4 : vector<32x1xf32> to vector<32x1024xf32>
    %7 = vector.broadcast %5 : vector<1x1024xf32> to vector<32x1024xf32>
    %8 = arith.mulf %6, %7 : vector<32x1024xf32>
    %9 = vector.extract_strided_slice %3 {offsets = [0, 1], sizes = [32, 1], strides = [1, 1]} : vector<32x2xf32> to vector<32x1xf32>
    %10 = vector.extract_strided_slice %0 {offsets = [1, 0], sizes = [1, 1024], strides = [1, 1]} : vector<2x1024xf32> to vector<1x1024xf32>
    %11 = vector.broadcast %9 : vector<32x1xf32> to vector<32x1024xf32>
    %12 = vector.broadcast %10 : vector<1x1024xf32> to vector<32x1024xf32>
    %13 = arith.mulf %11, %12 : vector<32x1024xf32>
    %14 = arith.addf %8, %13 : vector<32x1024xf32>
    %c0_6 = arith.constant 0 : index
    %c0_7 = arith.constant 0 : index
    %15 = vector.load %arg4[%c0_6, %c0_7] : memref<32x5xf32, #tpu.memory_space<vmem>>, vector<32x1xf32>
    %16 = vector.broadcast %15 : vector<32x1xf32> to vector<32x1024xf32>
    %17 = arith.addf %14, %16 : vector<32x1024xf32>
    %cst = arith.constant 0.000000e+00 : f32
    %18 = vector.broadcast %cst : f32 to vector<32x1024xf32>
    %19 = arith.maximumf %17, %18 : vector<32x1024xf32>
    %c1 = arith.constant 1 : index
    %c0_8 = arith.constant 0 : index
    %c0_9 = arith.constant 0 : index
    %20 = vector.load %arg3[%c1, %c0_8, %c0_9] : memref<5x32x48xf32, #tpu.memory_space<vmem>>, vector<1x32x32xf32>
    %21 = vector.shape_cast %20 : vector<1x32x32xf32> to vector<32x32xf32>
    %cst_10 = arith.constant dense<0.000000e+00> : vector<32x1024xf32>
    %22 = tpu.matmul %21, %19, %cst_10 {dimension_numbers = #tpu.dot_dimension_numbers<[1], [0], [0], [1], [0, 0, 1, 1], [], []>} : vector<32x32xf32>, vector<32x1024xf32>, vector<32x1024xf32> -> vector<32x1024xf32>
    %c1_11 = arith.constant 1 : index
    %c0_12 = arith.constant 0 : index
    %c32 = arith.constant 32 : index
    %23 = vector.load %arg3[%c1_11, %c0_12, %c32] : memref<5x32x48xf32, #tpu.memory_space<vmem>>, vector<1x32x16xf32>
    %24 = vector.shape_cast %23 : vector<1x32x16xf32> to vector<32x16xf32>
    %cst_13 = arith.constant dense<0.000000e+00> : vector<32x1024xf32>
    %25 = tpu.matmul %24, %1, %cst_13 {dimension_numbers = #tpu.dot_dimension_numbers<[1], [0], [0], [1], [0, 0, 1, 1], [], []>} : vector<32x16xf32>, vector<16x1024xf32>, vector<32x1024xf32> -> vector<32x1024xf32>
    %26 = arith.addf %22, %25 : vector<32x1024xf32>
    %c0_14 = arith.constant 0 : index
    %c1_15 = arith.constant 1 : index
    %27 = vector.load %arg4[%c0_14, %c1_15] : memref<32x5xf32, #tpu.memory_space<vmem>>, vector<32x1xf32>
    %28 = vector.broadcast %27 : vector<32x1xf32> to vector<32x1024xf32>
    %29 = arith.addf %26, %28 : vector<32x1024xf32>
    %cst_16 = arith.constant 0.000000e+00 : f32
    %30 = vector.broadcast %cst_16 : f32 to vector<32x1024xf32>
    %31 = arith.maximumf %29, %30 : vector<32x1024xf32>
    %c2 = arith.constant 2 : index
    %c0_17 = arith.constant 0 : index
    %c0_18 = arith.constant 0 : index
    %32 = vector.load %arg3[%c2, %c0_17, %c0_18] : memref<5x32x48xf32, #tpu.memory_space<vmem>>, vector<1x32x32xf32>
    %33 = vector.shape_cast %32 : vector<1x32x32xf32> to vector<32x32xf32>
    %cst_19 = arith.constant dense<0.000000e+00> : vector<32x1024xf32>
    %34 = tpu.matmul %33, %31, %cst_19 {dimension_numbers = #tpu.dot_dimension_numbers<[1], [0], [0], [1], [0, 0, 1, 1], [], []>} : vector<32x32xf32>, vector<32x1024xf32>, vector<32x1024xf32> -> vector<32x1024xf32>
    %c0_20 = arith.constant 0 : index
    %c2_21 = arith.constant 2 : index
    %35 = vector.load %arg4[%c0_20, %c2_21] : memref<32x5xf32, #tpu.memory_space<vmem>>, vector<32x1xf32>
    %36 = vector.broadcast %35 : vector<32x1xf32> to vector<32x1024xf32>
    %37 = arith.addf %34, %36 : vector<32x1024xf32>
    %cst_22 = arith.constant 0.000000e+00 : f32
    %38 = vector.broadcast %cst_22 : f32 to vector<32x1024xf32>
    %39 = arith.maximumf %37, %38 : vector<32x1024xf32>
    %c3 = arith.constant 3 : index
    %c0_23 = arith.constant 0 : index
    %c0_24 = arith.constant 0 : index
    %40 = vector.load %arg3[%c3, %c0_23, %c0_24] : memref<5x32x48xf32, #tpu.memory_space<vmem>>, vector<1x32x32xf32>
    %41 = vector.shape_cast %40 : vector<1x32x32xf32> to vector<32x32xf32>
    %cst_25 = arith.constant dense<0.000000e+00> : vector<32x1024xf32>
    %42 = tpu.matmul %41, %39, %cst_25 {dimension_numbers = #tpu.dot_dimension_numbers<[1], [0], [0], [1], [0, 0, 1, 1], [], []>} : vector<32x32xf32>, vector<32x1024xf32>, vector<32x1024xf32> -> vector<32x1024xf32>
    %c0_26 = arith.constant 0 : index
    %c3_27 = arith.constant 3 : index
    %43 = vector.load %arg4[%c0_26, %c3_27] : memref<32x5xf32, #tpu.memory_space<vmem>>, vector<32x1xf32>
    %44 = vector.broadcast %43 : vector<32x1xf32> to vector<32x1024xf32>
    %45 = arith.addf %42, %44 : vector<32x1024xf32>
    %cst_28 = arith.constant 0.000000e+00 : f32
    %46 = vector.broadcast %cst_28 : f32 to vector<32x1024xf32>
    %47 = arith.maximumf %45, %46 : vector<32x1024xf32>
    %c4 = arith.constant 4 : index
    %c0_29 = arith.constant 0 : index
    %c0_30 = arith.constant 0 : index
    %48 = vector.load %arg3[%c4, %c0_29, %c0_30] : memref<5x32x48xf32, #tpu.memory_space<vmem>>, vector<1x32x1xf32>
    %49 = vector.shape_cast %48 : vector<1x32x1xf32> to vector<32x1xf32>
    %50 = vector.broadcast %49 : vector<32x1xf32> to vector<32x1024xf32>
    %51 = arith.mulf %50, %47 : vector<32x1024xf32>
    %cst_31 = arith.constant dense<0.000000e+00> : vector<1024xf32>
    %52 = vector.multi_reduction <add>, %51, %cst_31 [0] : vector<32x1024xf32> to vector<1024xf32>
    %53 = vector.shape_cast %52 : vector<1024xf32> to vector<1x1024xf32>
    %c0_32 = arith.constant 0 : index
    %c4_33 = arith.constant 4 : index
    %54 = vector.load %arg4[%c0_32, %c4_33] : memref<32x5xf32, #tpu.memory_space<vmem>>, vector<1x1xf32>
    %55 = vector.broadcast %54 : vector<1x1xf32> to vector<1x1024xf32>
    %56 = arith.addf %53, %55 : vector<1x1024xf32>
    %c0_34 = arith.constant 0 : index
    %c0_35 = arith.constant 0 : index
    %57 = vector.load %arg5[%c0_34, %c0_35] : memref<1x1024xf32, #tpu.memory_space<vmem>>, vector<1x1024xf32>
    tpu.vector_store %arg5[%c0_34, %c0_35], %56 {strides = array<i32>} : memref<1x1024xf32, #tpu.memory_space<vmem>>, vector<1x1024xf32>,
    return
  }
  func.func @transform_0(%arg0: i32) -> (i32, i32) {
    %c0_i32 = arith.constant 0 : i32
    %c0_i32_0 = arith.constant 0 : i32
    return %c0_i32, %arg0 : i32, i32
  }
  func.func @transform_1(%arg0: i32) -> (i32, i32) {
    %c0_i32 = arith.constant 0 : i32
    %c0_i32_0 = arith.constant 0 : i32
    return %c0_i32, %arg0 : i32, i32
  }
  func.func @transform_2(%arg0: i32) -> (i32, i32, i32) {
    %c0_i32 = arith.constant 0 : i32
    %c0_i32_0 = arith.constant 0 : i32
    %c0_i32_1 = arith.constant 0 : i32
    %c0_i32_2 = arith.constant 0 : i32
    return %c0_i32, %c0_i32_0, %c0_i32_1 : i32, i32, i32
  }
  func.func @transform_3(%arg0: i32) -> (i32, i32) {
    %c0_i32 = arith.constant 0 : i32
    %c0_i32_0 = arith.constant 0 : i32
    %c0_i32_1 = arith.constant 0 : i32
    return %c0_i32, %c0_i32_0 : i32, i32
  }
  func.func @transform_4(%arg0: i32) -> (i32, i32) {
    %c0_i32 = arith.constant 0 : i32
    %c0_i32_0 = arith.constant 0 : i32
    return %c0_i32, %arg0 : i32, i32
  }
}

</mosaic_0001>

<bundles_post_ra>
// kernel: tpu_custom_call.1
= control target key start
LH: loop header
LB: loop body
LE: loop exit
PB: predicated region body
PF: predicated region fallthrough
CT: control target
= control target key end

     0   :  { %9 = vsyncpa [#allocation3], 0  ;;  %s4015_s0 = inlined_call_operand.vmem [shape: f32[2,2048], index: 0, kind: input, shape index: {}]   ;;  %s4016_s1 = inlined_call_operand.hbm [shape: f32[16,2048], index: 1, kind: input, shape index: {}]   ;;  %s4017_s2 = inlined_call_operand.hbm [shape: f32[5,32,48], index: 2, kind: input, shape index: {}]   ;;  %s4018_s3 = inlined_call_operand.vmem [shape: f32[32,5], index: 3, kind: input, shape index: {}]   ;;  %s4019_s4 = inlined_call_operand.hbm [shape: f32[1,2048], index: 4, kind: output, shape index: {}]  }
   0x1   :  { %11 = vsyncpa [#allocation3 + $0x1], 0 }
   0x2   :  { %12 = vsyncpa [#allocation6], 0 }
   0x3   :  { %13 = vsyncpa [#allocation4], 0 }
   0x4   :  { %15 = vsyncpa [#allocation4 + $0x1], 0  ;;  %s3110_s15 = smov 0   ;;  %s3112_s16 = smov 0  }
   0x5   :  { %s3114_s17 = smov 0   ;;  %s3116_s18 = smov 0  }
   0x6 LB: > { %s3131_s19 = sadd.s32 4294967295, %s3067_s18   ;;  %s2621_s20 = sadd.s32 4294967294, %s3067_s18   ;;  %s3067_s18 = sphi %s3116_s18, %s4061_s18   ;;  %s3063_s17 = sphi %s3114_s17, %s4060_s17   ;;  %s3059_s16 = sphi %s3112_s16, %s4059_s16   ;;  %s3055_s15 = sphi %s3110_s15, %s4058_s15  }
   0x7   : > { %s3135_s21 = sadd.s32 1, %s3067_s18   ;;  %s54_s22 = sadd.s32 1, %s3063_s17 }
   0x8   : > { %s51_s23 = ssub.s32 %s3067_s18, %s3135_s21  ;;  %p61_p0 = scmp.ne.s32.totalorder %s3063_s17, %s3059_s16 }
   0x9   : > { %p52_p1 = scmp.eq.s32.totalorder %s51_s23, 0  ;;  %p62_p2 = scmp.eq.s32.totalorder %s3067_s18, 0 }
   0xa   : > { %p67_p3 = scmp.ne.s32.totalorder %s3059_s16, %s3055_s15  ;;  %p4020_p4 = scmp.eq.s32.totalorder %s3131_s19, 0 }
   0xb   : > { %s3147_s24 = scalar_select %p52_p1, %s3063_s17, %s54_s22  }
   0xc   : > { %p3149_p5 = por %p62_p2, %p61_p0  ;;  %p3155_p6 = por %p4020_p4, %p67_p3 }
   0xd   : > { %p133_p7 = scmp.eq.s32.totalorder %s3131_s19, 1  ;;  %p139_p8 = scmp.eq.s32.totalorder %s2621_s20, 1 }
   0xe   : > { %s4032_s25 = scalar_select %p3149_p5, 1, 0 }
   0xf   : > { %s4033_s26 = scalar_select %p3155_p6, 1, 0 }
  0x10   : > { %p2622_p9 = scmp.ge.s32.totalorder %s3067_s18, 1  ;;  %p146_p10 = scmp.lt.s32.totalorder %s3067_s18, 3 }
  0x11   : > { %p3162_p11 = por %p133_p7, %p61_p0  ;;  %p3166_p12 = por %p139_p8, %p67_p3 }
  0x12   : > { %p3170_p13 = pnand %p2622_p9, %p146_p10  ;;  %s3069_s30 = smov [#allocation5]  }
  0x13   : > { %s4034_s27 = scalar_select %p3162_p11, 1, 0 }
  0x14   : > { %s4035_s28 = scalar_select %p3166_p12, 1, 0 }
  0x15   : > { %s4036_s29 = scalar_select %p3170_p13, 1, 0 }
  0x16   : > { %p2857_p1 = pneg %p3170_p13  ;;  %s158_s5 = sshll.u32 %s3069_s30, 4  ;;  %s159_s5 = int_to_ptr.vmem [resolvable:$true] %s158_s5 }
  0x17   : > { %s184_s7 = sand.u32 1, %s3063_s17   ;;  %s2939_s10 = scalar_lea.hbm %s4017_s2, 2560 }
  0x18   : > { %p3178_p2 = pnand %p2857_p1, %p4020_p4  ;;  %p2940_p7 = scmp.ne.s32.totalorder %s4017_s2, %s2939_s10 }
  0x19   : > { %p2946_p1 = scmp.lt.u32.totalorder %s2939_s10, %s4017_s2 }
  0x1a   : > { %p2941_p8 = pneg %p3178_p2 }
  0x1c   : > { %p2942_p9 = pnand %p2941_p8, %p2940_p7 }
  0x1e   : > { %p2943_p10 = pneg %p2942_p9 }
  0x20   : > { %p2948_p4 = pnand %p2946_p1, %p2943_p10 }
  0x22   : > { %2951 = shalt.err (!%p2948_p4)
}
  0x23   : > { %s2952_s20 = scalar_lea.vmem %s159_s5, 2560  ;;  %p2960_p11 = scmp.lt.s32.totalorder %s159_s5, %s159_s5 }
  0x24   : > { %p2953_p0 = scmp.ne.s32.totalorder %s159_s5, %s2952_s20  ;;  %p2961_p6 = scmp.lt.s32.totalorder %s2952_s20, %s2952_s20 }
  0x26   : > { %p2955_p3 = pnand %p2953_p0, %p2941_p8  ;;  %p2962_p13 = por %p2961_p6, %p2960_p11 }
  0x28   : > { %p2956_p12 = pneg %p2955_p3 }
  0x2a   : > { %p2963_p5 = pnand %p2962_p13, %p2956_p12 }
  0x2c   : > { %2966 = shalt.err (!%p2963_p5)
}
  0x2d   : > { %s3070_s22 = smov 128   ;;  %s3071_s23 = smov 8  }
  0x2e   : > { %2860 = dma.hbm_to_vmem [thread:$0]  (!%p3178_p2), %s4017_s2, 2560, %s159_s5, [#allocation6], %s3070_s22, %s3070_s22, %s3071_s23  }
  0x2f   : > { %p4038_p4 = scmp.ne.s32.totalorder %s4032_s25, 0  ;;  %p4039_p7 = scmp.lt.s32.totalorder %s3067_s18, 2 }
  0x30   : > { %s2625_s10 = sshll.u32 %s184_s7, 7  ;;  %s2703_s11 = sshll.u32 %s3067_s18, 10 }
  0x31   : > { %p3205_p0 = pnand %p4039_p7, %p4038_p4  ;;  %s3213_s14 = scalar_lea.hbm %s4016_s1, %s2703_s11 }
  0x32   : > { %s188_s5 = scalar_lea.vmem [#allocation2], %s2625_s10  ;;  %s3217_s6 = scalar_lea.sflag [#allocation3], %s184_s7 }
  0x33   : > { %s195_s25 = sshll.u32 %s188_s5, 4  ;;  %s2967_s20 = scalar_lea.hbm %s3213_s14, 2048  ;;  %s3215_s25 = int_to_ptr.vmem [resolvable:$true] %s195_s25 }
  0x34   : > { %p2968_p5 = scmp.ne.s32.totalorder %s3213_s14, %s2967_s20  ;;  %p2969_p6 = pneg %p3205_p0 }
  0x35   : > { %s2972_s30 = scalar_lea.hbm %s4016_s1, 4096  ;;  %p2973_p13 = scmp.lt.u32.totalorder %s3213_s14, %s4016_s1 }
  0x36   : > { %p2970_p11 = pnand %p2969_p6, %p2968_p5  ;;  %p2974_p2 = scmp.lt.u32.totalorder %s2972_s30, %s2967_s20 }
  0x37   : > { %p2976_p8 = scmp.lt.u32.totalorder %s2967_s20, %s3213_s14 }
  0x38   : > { %p2971_p12 = pneg %p2970_p11  ;;  %p2975_p3 = por %p2974_p2, %p2973_p13 }
  0x3a   : > { %p2977_p9 = por %p2976_p8, %p2975_p3 }
  0x3c   : > { %p2978_p10 = pnand %p2977_p9, %p2971_p12 }
  0x3e   : > { %2981 = shalt.err (!%p2978_p10)
}
  0x3f   : > { %s2982_s7 = scalar_lea.vmem %s3215_s25, 2048  ;;  %s3072_s10 = smov [#allocation2]  }
  0x40   : > { %p2983_p1 = scmp.ne.s32.totalorder %s3215_s25, %s2982_s7  ;;  %s2987_s12 = sshll.u32 %s3072_s10, 4  ;;  %s2988_s12 = int_to_ptr.vmem [resolvable:$false] %s2987_s12 }
  0x41   : > { %s2989_s13 = scalar_lea.vmem %s2988_s12, 4096  ;;  %p2990_p5 = scmp.lt.s32.totalorder %s3215_s25, %s2988_s12 }
  0x42   : > { %p2985_p4 = pnand %p2983_p1, %p2969_p6  ;;  %p2991_p11 = scmp.lt.s32.totalorder %s2989_s13, %s2982_s7 }
  0x44   : > { %p2986_p7 = pneg %p2985_p4  ;;  %p2992_p13 = por %p2991_p11, %p2990_p5 }
  0x46   : > { %p2993_p2 = pnand %p2992_p13, %p2986_p7 }
  0x48   : > { %2996 = shalt.err (!%p2993_p2)
}
  0x49   : > { %s3073_s5 = smov 2048   ;;  %s3074_s20 = smov 1024  }
  0x4a   : > { %s3075_s22 = smov 64   ;;  %p4041_p6 = scmp.ne.s32.totalorder %s4036_s29, 0 }
  0x4b   : > { %2864 = dma.hbm_to_vmem [thread:$0]  (!%p3205_p0), %s3213_s14, 2048, %s3215_s25, %s3217_s6, %s3073_s5, %s3074_s20, %s3075_s22  }
  0x4c   : > { %207 = sbr.rel (%p4041_p6) target bundleno = 1028 (0x404), region = 36 }
  0x53   : > { %s3248_s23 = sand.u32 1, %s3059_s16   ;;  %p4042_p12 = scmp.ne.s32.totalorder %s4033_s26, 0 }
  0x54   : > { %s2629_s30 = sshll.u32 %s3248_s23, 7  ;;  %s210_s8 = scalar_lea.sflag [#allocation3], %s3248_s23 }
  0x55   : > { %s3252_s11 = scalar_lea.vmem [#allocation2], %s2629_s30 }
  0x56   : > { %3042 = dma.done.wait (%p4042_p12), %s210_s8, 2048  }
  0x57   : > { %3044 = vsyncadd (%p4042_p12), %s210_s8, 4294965248  ;;  %p4043_p0 = scmp.eq.s32.totalorder %s3131_s19, 0 }
  0x59   : > { %3046 = dma.done.wait (%p4043_p0), [#allocation6], 2560   ;;  %p4044_p3 = pmov %p4043_p0 }
  0x5a   : > { %v4024_v0 = vmov 0   ;;  %v3077_v1 = vmov 1   ;;  %v4026_v2 = vmov 0.0   ;;  %v3266_v3 = vld [vmem:[#allocation5 + $0x20] sm:$0xff]  ;;  %s3079_s26 = smov 96   ;;  %v3270_v5 = vld [vmem:[#allocation5 + $0x28] sm:$0xff]  ;;  %v299_v39 = vlaneseq }
  0x5b   : > { %3048 = vsyncadd (%p4044_p3), [#allocation6], 4294964736  ;;  %2919 = vset.pattern.permute.xlu1 %v4024_v0  ;;  %2920 = vset.pattern.permute.xlu0 %v3077_v1  ;;  %v273_v4 = vld [vmem:[#allocation5] sm:$0xff]  ;;  %v274_v6 = vld [vmem:[#allocation5 + $0x8] sm:$0xff]  ;;  %s2632_s13 = sshll.u32 %s3131_s19, 3  ;;  %vm660_vm0 = vcmask 130048  }
  0x5c   : > { %733 = vmatprep.mubr.f32.mxu0 %v4026_v2  ;;  %822 = vmatprep.mubr.f32.mxu1 %v4026_v2  ;;  %v258_v7 = vld [vmem:[%s3252_s11 + $0x8] sm:$0xff]  ;;  %v260_v9 = vld [vmem:[%s3252_s11 + $0x18] sm:$0xff]  ;;  %v257_v12 = vld [vmem:[%s3252_s11] sm:$0xff]  ;;  %p248_p8 = scmp.lt.s32.totalorder %s2632_s13, 15  ;;  %v3342_v41 = vshrl.u32 %v299_v39, 7  ;;  %vm1025_vm1 = vcmask 261120  }
  0x5d   : > { %652 = vrot.lane.b32.xlu0 %v3266_v3, %s3079_s26  ;;  %279 = vperm.xlu1 %2919, %v273_v4   ;;  %v266_v8 = vld [vmem:[%s3252_s11 + $0x48] sm:$0xff]  ;;  %v268_v11 = vld [vmem:[%s3252_s11 + $0x58] sm:$0xff]  ;;  %v265_v13 = vld [vmem:[%s3252_s11 + $0x40] sm:$0xff]  ;;  %s2631_s12 = sshll.u32 %s3248_s23, 3  ;;  %p4055_p10 = scmp.ne.s32.totalorder %s4034_s27, 0 }
  0x5e   : > { %v2705_v10 = vpack.c.bf16 %v266_v8, %v258_v7  ;;  %v2709_v14 = vpack.c.bf16 %v268_v11, %v260_v9  ;;  %v2707_v15 = vpack.c.bf16 %v265_v13, %v257_v12  ;;  %v259_v16 = vld [vmem:[%s3252_s11 + $0x10] sm:$0xff]  ;;  %v276_v19 = vld [vmem:[#allocation5 + $0x18] sm:$0xff]  ;;  %v262_v23 = vld [vmem:[%s3252_s11 + $0x28] sm:$0xff]  ;;  %s4063_s13 = smov (!%p248_p8, %s2632_s13), 15  ;;  %4048 = vst [vmem:[#allocation14_spill] sm:$0xff] %v3342_v41  ;;  %v301_v43 = vsub.s32 0, %v3342_v41 }
  0x5f   : > { %v267_v17 = vld [vmem:[%s3252_s11 + $0x50] sm:$0xff]  ;;  %v3289_v22 = vld [vmem:[#allocation5 + $0x38] sm:$0xff]  ;;  %v270_v24 = vld [vmem:[%s3252_s11 + $0x68] sm:$0xff]  ;;  %s2633_s5 = sshll.u32 %s4063_s13, 1  ;;  %v305_v44 = vsub.s32 2, %v3342_v41  ;;  %v313_v45 = vsub.s32 6, %v3342_v41 }
  0x60   : > { %2706 = vmatprep.subr.bf16.mxu0 %v2705_v10  ;;  %v2711_v18 = vpack.c.bf16 %v267_v17, %v259_v16  ;;  %2710 = vmatprep.subr.bf16.mxu1 %v2709_v14  ;;  %v3283_v20 = vld [vmem:[#allocation5 + $0x30] sm:$0xff]  ;;  %v264_v25 = vld [vmem:[%s3252_s11 + $0x38] sm:$0xff]  ;;  %v2713_v26 = vpack.c.bf16 %v270_v24, %v262_v23  ;;  %v3306_v30 = vld [vmem:[%s4018_s3] sm:$0xff]  ;;  %s251_s30 = scalar_lea.vmem %s4015_s0, %s2633_s5  ;;  %v309_v46 = vsub.s32 4, %v3342_v41  ;;  %v421_v48 = vsub.s32 1, %v3342_v41  ;;  %s2704_s13 = sshll.u32 %s3131_s19, 7 }
  0x61   : > { %654 = vrot.lane.b32.xlu0 %v3270_v5, %s3079_s26  ;;  %284 = vperm.xlu1 %2919, %v274_v6   ;;  %v275_v21 = vld [vmem:[#allocation5 + $0x10] sm:$0xff]  ;;  %v272_v27 = vld [vmem:[%s3252_s11 + $0x78] sm:$0xff]  ;;  %v3314_v31 = vld [vmem:[%s4018_s3 + $0x8] sm:$0xff]  ;;  %v425_v49 = vsub.s32 3, %v3342_v41  ;;  %v433_v50 = vsub.s32 7, %v3342_v41  ;;  %v429_v51 = vsub.s32 5, %v3342_v41  ;;  %s3971_s8 = scalar_lea.hbm %s4019_s4, %s2704_s13 }
  0x62   : > { %2708 = vmatpush1.bf16.msra.mxu0 %v2707_v15  ;;  %2712 = vmatpush1.bf16.msra.mxu1 %v2711_v18  ;;  %v2717_v28 = vpack.c.bf16 %v272_v27, %v264_v25  ;;  %v3301_v29 = vld [vmem:[%s4018_s3 + $0x18] sm:$0xff]  ;;  %4046 = vst [vmem:[#allocation12_spill] sm:$0xff] %v3314_v31  ;;  %v3319_v32 = vld [vmem:[%s4018_s3 + $0x10] sm:$0xff]  ;;  %v261_v33 = vld [vmem:[%s3252_s11 + $0x20] sm:$0xff]  ;;  %s246_s5 = scalar_lea.vmem [#allocation7], %s2631_s12  ;;  %s3084_s19 = smov [#allocation7]  }
  0x63   : > { %4045 = vst [vmem:[#allocation11_spill] sm:$0xff] %v3301_v29  ;;  %2714 = vmatprep.subr.bf16.mxu0 %v2713_v26  ;;  %4047 = vst [vmem:[#allocation13_spill] sm:$0xff] %v3319_v32  ;;  %v269_v34 = vld [vmem:[%s3252_s11 + $0x60] sm:$0xff]  ;;  %v263_v35 = vld [vmem:[%s3252_s11 + $0x30] sm:$0xff]  ;;  %s2529_s20 = sshll.u32 %s246_s5, 4  ;;  %s3001_s29 = sshll.u32 %s3084_s19, 4  ;;  %s3973_s20 = int_to_ptr.vmem [resolvable:$true] %s2529_s20  ;;  %s3002_s29 = int_to_ptr.vmem [resolvable:$false] %s3001_s29 }
  0x64   : > { %2718 = vmatprep.subr.bf16.mxu1 %v2717_v28  ;;  %v271_v36 = vld [vmem:[%s3252_s11 + $0x70] sm:$0xff]  ;;  %v2715_v37 = vpack.c.bf16 %v269_v34, %v261_v33  ;;  %v255_v47 = vld [vmem:[%s251_s30] sm:$0xff]  ;;  %v256_v52 = vld [vmem:[%s251_s30 + $0x8] sm:$0xff]  ;;  %s2515_s11 = scalar_lea.sflag [#allocation4], %s3248_s23  ;;  %s3003_s9 = scalar_lea.vmem %s3002_s29, 256 }
  0x65   : > { %404 = vperm.xlu0 %2920, %v273_v4   ;;  %2921 = vset.pattern.permute.xlu1 %v3077_v1  ;;  %v2719_v38 = vpack.c.bf16 %v271_v36, %v263_v35  ;;  %v306_v53 = vrot.slane %v255_v47, %v305_v44  ;;  %v314_v54 = vrot.slane %v255_v47, %v313_v45  ;;  %p3004_p7 = scmp.lt.s32.totalorder %s3973_s20, %s3002_s29 }
  0x66   : > { %408 = vperm.xlu1 %2921, %v274_v6   ;;  %v302_v55 = vrot.slane %v255_v47, %v301_v43  ;;  %v310_v56 = vrot.slane %v255_v47, %v309_v46  ;;  %v322_v57 = vrot.slane %v256_v52, %v305_v44  ;;  %v330_v58 = vrot.slane %v256_v52, %v313_v45 }
  0x67   : > { %v318_v59 = vrot.slane %v256_v52, %v301_v43  ;;  %v326_v60 = vrot.slane %v256_v52, %v309_v46  ;;  %v426_v62 = vrot.slane %v255_v47, %v425_v49  ;;  %v434_v63 = vrot.slane %v255_v47, %v433_v50 }
  0x68   : > { %v430_v4 = vrot.slane %v255_v47, %v429_v51  ;;  %v442_v6 = vrot.slane %v256_v52, %v425_v49  ;;  %v450_v7 = vrot.slane %v256_v52, %v433_v50  ;;  %v438_v8 = vrot.slane %v256_v52, %v421_v48 }
  0x69   : > { %416 = vperm.xlu0 %2920, %v276_v19   ;;  %v446_v9 = vrot.slane %v256_v52, %v429_v51  ;;  %v3363_v10 = vrot.slane %v306_v53, %v301_v43  ;;  %v3365_v11 = vrot.slane %v314_v54, %v301_v43  ;;  %v3367_v12 = vrot.slane %v302_v55, %v301_v43 }
  0x6a   : > { %656 = vrot.lane.b32.xlu1 %v3283_v20, %s3079_s26  ;;  %v3369_v13 = vrot.slane %v310_v56, %v301_v43  ;;  %v3371_v14 = vrot.slane %v322_v57, %v301_v43  ;;  %v3373_v15 = vrot.slane %v330_v58, %v301_v43  ;;  %v3375_v16 = vrot.slane %v318_v59, %v301_v43 }
  0x6b   : > { %2922 = vset.pattern.permute.xlu1 %v4024_v0  ;;  %v3377_v17 = vrot.slane %v326_v60, %v301_v43  ;;  %v3385_v24 = vrot.slane %v430_v4, %v421_v48  ;;  %v3387_v25 = vrot.slane %v442_v6, %v421_v48  ;;  %v3389_v26 = vrot.slane %v450_v7, %v421_v48 }
  0x6c   : > { %v3391_v27 = vrot.slane %v438_v8, %v421_v48  ;;  %v3393_v28 = vrot.slane %v446_v9, %v421_v48 }
  0x6d   : > { %2924 = vset.pattern.permute.xlu0 %v4024_v0 }
  0x6e   : > { %289 = vperm.xlu0 %2924, %v275_v21   ;;  %294 = vperm.xlu1 %2922, %v276_v19   ;;  %v3379_v19 = vrot.slane %v426_v62, %v421_v48 }
  0x72   : > { %658 = vrot.lane.b32.xlu0 %v3289_v22, %s3079_s26  ;;  %2923 = vset.pattern.permute.xlu1 %v3077_v1  ;;  %s2997_s26 = scalar_lea.vmem %s3973_s20, 128 }
  0x73   : > { %412 = vperm.xlu1 %2923, %v275_v21   ;;  %v3381_v21 = vrot.slane %v434_v63, %v421_v48  ;;  %p2998_p9 = scmp.ne.s32.totalorder %s3973_s20, %s2997_s26  ;;  %p3005_p5 = scmp.lt.s32.totalorder %s3003_s9, %s2997_s26 }
  0x75   : > { %p2999_p1 = pnand %p2998_p9, %p4055_p10  ;;  %p3006_p11 = por %p3005_p5, %p3004_p7 }
  0x76   : > { %576 = vperm.xlu0 %2924, %v3301_v29  }
  0x77   : > { %2925 = vset.pattern.permute.xlu1 %v4024_v0  ;;  %p3000_p4 = pneg %p2999_p1 }
  0x78   : > { %561 = vperm.xlu1 %2925, %v3306_v30  }
  0x79   : > { %p3007_p13 = pnand %p3006_p11, %p3000_p4 }
  0x7a   : > { %2927 = vset.pattern.permute.xlu0 %v3077_v1 }
  0x7b   : > { %1399 = vperm.xlu0 %2927, %v3319_v32  }
  0x7c   : > { %566 = vperm.xlu1 %2925, %v3314_v31  }
  0x80   : > { %571 = vperm.xlu1 %2925, %v3319_v32  }
  0x84   : > { %2926 = vset.pattern.permute.xlu1 %v3077_v1  ;;  %v422_v1 = vrot.slane %v255_v47, %v421_v48 }
  0x85   : > { %1391 = vperm.xlu1 %2926, %v3306_v30  }
  0x86   : > { %v3383_v23 = vrot.slane %v422_v1, %v421_v48 }
  0x89   : > { %1395 = vperm.xlu1 %2926, %v3314_v31  }
  0x8d   : > { %1403 = vperm.xlu1 %2926, %v3301_v29  }
  0xcf   : > { %v3334_v40 = vpop.permute.xlu0 %652 }
  0xd0   : > { %2634 = vmatmul.mubr.msk.f32.vlgmr.msra.gmra.mrb[0].mxu0 %vm660_vm0, %v3334_v40  ;;  %2638 = vmatmul.mubr.msk.f32.vlgmr.msra.gmra.mrb[0].mxu1 %vm660_vm0, %v3334_v40 }
  0xd1   : > { %739 = vmatprep.mubr.f32.mxu0 %v4026_v2  ;;  %828 = vmatprep.mubr.f32.mxu1 %v4026_v2 }
  0xd2   : > { %2716 = vmatpush1.bf16.msra.mxu0 %v2715_v37  ;;  %2720 = vmatpush1.bf16.msra.mxu1 %v2719_v38 }
  0xd3   : > { %v3344_v42 = vpop.permute.xlu0 %654 }
  0xd4   : > { %2635 = vmatmul.mubr.msk.f32.gmra.mrb[2].mxu0 %vm660_vm0, %v3344_v42  ;;  %2639 = vmatmul.mubr.msk.f32.gmra.mrb[2].mxu1 %vm660_vm0, %v3344_v42 }
  0xd5   : > { %745 = vmatprep.mubr.f32.mxu0 %v4026_v2  ;;  %834 = vmatprep.mubr.f32.mxu1 %v4026_v2 }
  0xdc   : > { %v280_v61 = vpop.permute.xlu1 %279 }
  0xdd   : > { %v372_v33 = vmul.f32 %v3363_v10, %v280_v61  ;;  %v374_v34 = vmul.f32 %v3365_v11, %v280_v61  ;;  %v371_v35 = vmul.f32 %v3367_v12, %v280_v61  ;;  %v373_v36 = vmul.f32 %v3369_v13, %v280_v61 }
  0xde   : > { %v376_v37 = vmul.f32 %v3371_v14, %v280_v61  ;;  %v378_v38 = vmul.f32 %v3373_v15, %v280_v61  ;;  %v375_v39 = vmul.f32 %v3375_v16, %v280_v61  ;;  %v3403_v43 = vmul.f32 %v3377_v17, %v280_v61 }
  0xe0   : > { %v285_v18 = vpop.permute.xlu1 %284 }
  0xe1   : > { %v380_v45 = vmul.f32 %v3363_v10, %v285_v18  ;;  %v382_v46 = vmul.f32 %v3365_v11, %v285_v18  ;;  %v379_v47 = vmul.f32 %v3367_v12, %v285_v18  ;;  %v381_v48 = vmul.f32 %v3369_v13, %v285_v18 }
  0xe2   : > { %v384_v58 = vmul.f32 %v3371_v14, %v285_v18  ;;  %v386_v59 = vmul.f32 %v3373_v15, %v285_v18  ;;  %v383_v60 = vmul.f32 %v3375_v16, %v285_v18  ;;  %v385_v61 = vmul.f32 %v3377_v17, %v285_v18 }
  0xe4   : > { %v405_v44 = vpop.permute.xlu0 %404 }
  0xe5   : > { %v409_v49 = vpop.permute.xlu1 %408  ;;  %v492_v50 = vmul.f32 %v3379_v19, %v405_v44  ;;  %v494_v51 = vmul.f32 %v3381_v21, %v405_v44  ;;  %v491_v52 = vmul.f32 %v3383_v23, %v405_v44  ;;  %v493_v53 = vmul.f32 %v3385_v24, %v405_v44 }
  0xe6   : > { %v500_v54 = vmul.f32 %v3379_v19, %v409_v49  ;;  %v502_v55 = vmul.f32 %v3381_v21, %v409_v49  ;;  %v499_v56 = vmul.f32 %v3383_v23, %v409_v49  ;;  %v501_v57 = vmul.f32 %v3385_v24, %v409_v49 }
  0xe7   : > { %v3423_v63 = vadd.f32 %v492_v50, %v372_v33  ;;  %v3425_v1 = vadd.f32 %v494_v51, %v374_v34  ;;  %v3427_v4 = vadd.f32 %v491_v52, %v371_v35  ;;  %v3429_v6 = vadd.f32 %v493_v53, %v373_v36 }
  0xe8   : > { %v3421_v62 = vpop.permute.xlu0 %416  ;;  %v3433_v8 = vadd.f32 %v500_v54, %v380_v45  ;;  %v3435_v9 = vadd.f32 %v502_v55, %v382_v46  ;;  %v3437_v0 = vadd.f32 %v499_v56, %v379_v47  ;;  %v3439_v2 = vadd.f32 %v501_v57, %v381_v48 }
  0xe9   : > { %v3431_v7 = vpop.permute.xlu1 %656  ;;  %v496_v18 = vmul.f32 %v3387_v25, %v405_v44  ;;  %v504_v33 = vmul.f32 %v3387_v25, %v409_v49  ;;  %v498_v34 = vmul.f32 %v3389_v26, %v405_v44  ;;  %v4049_v35 = vmov 0.0  }
  0xea   : > { %2636 = vmatmul.mubr.msk.f32.gmra.mrb[4].mxu0 %vm660_vm0, %v3431_v7  ;;  %2640 = vmatmul.mubr.msk.f32.gmra.mrb[4].mxu1 %vm660_vm0, %v3431_v7  ;;  %v506_v36 = vmul.f32 %v3389_v26, %v409_v49  ;;  %v495_v45 = vmul.f32 %v3391_v27, %v405_v44  ;;  %v503_v46 = vmul.f32 %v3391_v27, %v409_v49 }
  0xeb   : > { %751 = vmatprep.mubr.f32.mxu0 %v4049_v35  ;;  %840 = vmatprep.mubr.f32.mxu1 %v4049_v35  ;;  %v516_v47 = vmul.f32 %v3379_v19, %v3421_v62  ;;  %v518_v48 = vmul.f32 %v3381_v21, %v3421_v62  ;;  %v515_v50 = vmul.f32 %v3383_v23, %v3421_v62 }
  0xec   : > { %v517_v51 = vmul.f32 %v3385_v24, %v3421_v62  ;;  %v3465_v54 = vadd.f32 %v496_v18, %v376_v37  ;;  %v3467_v55 = vadd.f32 %v504_v33, %v384_v58  ;;  %v3469_v56 = vadd.f32 %v498_v34, %v378_v38 }
  0xed   : > { %v3461_v52 = vpop.permute.xlu0 %289  ;;  %v3463_v53 = vpop.permute.xlu1 %294  ;;  %v497_v57 = vmul.f32 %v3393_v28, %v405_v44  ;;  %v3476_v32 = vadd.f32 %v506_v36, %v386_v59  ;;  %v505_v31 = vmul.f32 %v3393_v28, %v409_v49  ;;  %v3483_v38 = vadd.f32 %v495_v45, %v375_v39 }
  0xee   : > { %v396_v41 = vmul.f32 %v3363_v10, %v3463_v53  ;;  %v398_v29 = vmul.f32 %v3365_v11, %v3463_v53  ;;  %v388_v37 = vmul.f32 %v3363_v10, %v3461_v52  ;;  %v395_v58 = vmul.f32 %v3367_v12, %v3463_v53 }
  0xef   : > { %v3485_v18 = vadd.f32 %v503_v46, %v383_v60  ;;  %v390_v44 = vmul.f32 %v3365_v11, %v3461_v52  ;;  %v387_v33 = vmul.f32 %v3367_v12, %v3461_v52  ;;  %v389_v59 = vmul.f32 %v3369_v13, %v3461_v52 }
  0xf0   : > { %v397_v49 = vmul.f32 %v3369_v13, %v3463_v53  ;;  %v548_v34 = vadd.f32 %v516_v47, %v396_v41  ;;  %v550_v36 = vadd.f32 %v518_v48, %v398_v29  ;;  %v3498_v39 = vadd.f32 %v497_v57, %v3403_v43 }
  0xf1   : > { %v3495_v10 = vpop.permute.xlu0 %658  ;;  %v400_v60 = vmul.f32 %v3371_v14, %v3463_v53  ;;  %v547_v12 = vadd.f32 %v515_v50, %v395_v58  ;;  %v3508_v13 = vadd.f32 %v505_v31, %v385_v61  ;;  %v520_v29 = vmul.f32 %v3387_v25, %v3421_v62 }
  0xf2   : > { %v3502_v11 = vpop.permute.xlu1 %412  ;;  %2637 = vmatmul.mubr.msk.f32.gmra.mrb[6].mxu0 %vm660_vm0, %v3495_v10  ;;  %2641 = vmatmul.mubr.msk.f32.gmra.mrb[6].mxu1 %vm660_vm0, %v3495_v10  ;;  %v549_v46 = vadd.f32 %v517_v51, %v397_v49  ;;  %v392_v31 = vmul.f32 %v3371_v14, %v3461_v52  ;;  %v3524_v61 = vmul.f32 %v3373_v15, %v3461_v52 }
  0xf3   : > { %911 = vmatprep.mubr.f32.mxu0 %v4049_v35  ;;  %1000 = vmatprep.mubr.f32.mxu1 %v4049_v35  ;;  %v508_v41 = vmul.f32 %v3379_v19, %v3502_v11  ;;  %v510_v43 = vmul.f32 %v3381_v21, %v3502_v11  ;;  %v507_v45 = vmul.f32 %v3383_v23, %v3502_v11 }
  0xf4   : > { %v3528_v47 = vmul.f32 %v3373_v15, %v3463_v53  ;;  %v509_v19 = vmul.f32 %v3385_v24, %v3502_v11  ;;  %v512_v21 = vmul.f32 %v3387_v25, %v3502_v11  ;;  %v3536_v23 = vadd.f32 %v520_v29, %v400_v60 }
  0xf5   : > { %v3530_v48 = vpop.permute.xlu0 %576  ;;  %v3540_v14 = vmul.f32 %v3389_v26, %v3502_v11  ;;  %v540_v51 = vadd.f32 %v508_v41, %v388_v37  ;;  %v542_v57 = vadd.f32 %v510_v43, %v390_v44  ;;  %v539_v58 = vadd.f32 %v507_v45, %v387_v33 }
  0xf6   : > { %2642 = vmatmul.mubr.msk.f32.vlgmr.msra.gmra.mrb[8].mxu0 %vm660_vm0, %v3334_v40  ;;  %2646 = vmatmul.mubr.msk.f32.vlgmr.msra.gmra.mrb[8].mxu1 %vm660_vm0, %v3334_v40  ;;  %v3547_v15 = vadd.f32 %v3530_v48, %v548_v34  ;;  %v3550_v24 = vadd.f32 %v3530_v48, %v550_v36  ;;  %v3553_v25 = vadd.f32 %v3530_v48, %v547_v12 }
  0xf7   : > { %v3555_v50 = vpop.permute.xlu1 %561  ;;  %917 = vmatprep.mubr.f32.mxu0 %v4049_v35  ;;  %1006 = vmatprep.mubr.f32.mxu1 %v4049_v35  ;;  %v541_v60 = vadd.f32 %v509_v19, %v389_v59  ;;  %v3568_v12 = vadd.f32 %v3530_v48, %v549_v46  ;;  %v544_v29 = vadd.f32 %v512_v21, %v392_v31 }
  0xf8   : > { %v580_v40 = vadd.f32 %v3555_v50, %v3423_v63  ;;  %v582_v49 = vadd.f32 %v3555_v50, %v3425_v1  ;;  %v579_v34 = vadd.f32 %v3555_v50, %v3427_v4  ;;  %v581_v36 = vadd.f32 %v3555_v50, %v3429_v6 }
  0xf9   : > { %v3572_v37 = vmul.f32 %v3389_v26, %v3421_v62  ;;  %v636_v1 = vmax.f32 %v3547_v15, 0.0  ;;  %v638_v4 = vmax.f32 %v3550_v24, 0.0  ;;  %v635_v6 = vmax.f32 %v3553_v25, 0.0 }
  0xfa   : > { %2643 = vmatmul.mubr.msk.f32.gmra.mrb[10].mxu0 %vm660_vm0, %v3344_v42  ;;  %2647 = vmatmul.mubr.msk.f32.gmra.mrb[10].mxu1 %vm660_vm0, %v3344_v42  ;;  %v612_v63 = vmax.f32 %v580_v40, 0.0  ;;  %v614_v26 = vmax.f32 %v582_v49, 0.0  ;;  %v611_v33 = vmax.f32 %v579_v34, 0.0  ;;  %v613_v59 = vmax.f32 %v581_v36, 0.0 }
  0xfb   : > { %v567_v44 = vpop.permute.xlu1 %566  ;;  %923 = vmatprep.mubr.f32.mxu0 %v4049_v35  ;;  %1012 = vmatprep.mubr.f32.mxu1 %v4049_v35  ;;  %v584_v41 = vadd.f32 %v3555_v50, %v3465_v54  ;;  %v586_v19 = vadd.f32 %v3555_v50, %v3469_v56  ;;  %v583_v15 = vadd.f32 %v3555_v50, %v3483_v38 }
  0xfc   : > { %v588_v42 = vadd.f32 %v567_v44, %v3433_v8  ;;  %v590_v43 = vadd.f32 %v567_v44, %v3435_v9  ;;  %v587_v45 = vadd.f32 %v567_v44, %v3437_v0  ;;  %v589_v46 = vadd.f32 %v567_v44, %v3439_v2 }
  0xfd   : > { %v592_v31 = vadd.f32 %v567_v44, %v3467_v55  ;;  %v594_v21 = vadd.f32 %v567_v44, %v3476_v32  ;;  %v637_v32 = vmax.f32 %v3568_v12, 0.0  ;;  %v616_v55 = vmax.f32 %v584_v41, 0.0 }
  0xfe   : > { %2644 = vmatmul.mubr.msk.f32.gmra.mrb[12].mxu0 %vm660_vm0, %v3431_v7  ;;  %2648 = vmatmul.mubr.msk.f32.gmra.mrb[12].mxu1 %vm660_vm0, %v3431_v7  ;;  %v620_v8 = vmax.f32 %v588_v42, 0.0  ;;  %v622_v0 = vmax.f32 %v590_v43, 0.0  ;;  %v619_v9 = vmax.f32 %v587_v45, 0.0  ;;  %v621_v2 = vmax.f32 %v589_v46, 0.0 }
  0xff   : > { %v3599_v54 = vpop.permute.xlu1 %571  ;;  %929 = vmatprep.mubr.f32.mxu0 %v4049_v35  ;;  %1018 = vmatprep.mubr.f32.mxu1 %v4049_v35  ;;  %v624_v56 = vmax.f32 %v592_v31, 0.0  ;;  %v591_v38 = vadd.f32 %v567_v44, %v3485_v18  ;;  %v618_v12 = vmax.f32 %v586_v19, 0.0  ;;  %v593_v41 = vadd.f32 %v567_v44, %v3508_v13 }
 0x100   : > { %v2721_v24 = vpack.c.bf16 %v620_v8, %v612_v63  ;;  %v2729_v25 = vpack.c.bf16 %v622_v0, %v614_v26  ;;  %v2723_v40 = vpack.c.bf16 %v619_v9, %v611_v33  ;;  %v2731_v7 = vpack.c.bf16 %v621_v2, %v613_v59 }
 0x101   : > { %v596_v49 = vadd.f32 %v3599_v54, %v540_v51  ;;  %v598_v34 = vadd.f32 %v3599_v54, %v542_v57  ;;  %v595_v36 = vadd.f32 %v3599_v54, %v539_v58  ;;  %v597_v42 = vadd.f32 %v3599_v54, %v541_v60 }
 0x102   : > { %2645 = vmatmul.mubr.msk.f32.gmra.mrb[14].mxu0 %vm660_vm0, %v3495_v10  ;;  %2649 = vmatmul.mubr.msk.f32.gmra.mrb[14].mxu1 %vm660_vm0, %v3495_v10  ;;  %v2737_v18 = vpack.c.bf16 %v624_v56, %v616_v55  ;;  %v626_v63 = vmax.f32 %v594_v21, 0.0  ;;  %v615_v26 = vmax.f32 %v583_v15, 0.0  ;;  %v623_v58 = vmax.f32 %v591_v38, 0.0 }
 0x103   : > { %2722 = vmatprep.subr.bf16.mxu0 %v2721_v24  ;;  %2730 = vmatprep.subr.bf16.mxu1 %v2729_v25  ;;  %v628_v33 = vmax.f32 %v596_v49, 0.0  ;;  %v630_v51 = vmax.f32 %v598_v34, 0.0  ;;  %v627_v59 = vmax.f32 %v595_v36, 0.0  ;;  %v629_v57 = vmax.f32 %v597_v42, 0.0 }
 0x104   : > { %2724 = vmatpush1.bf16.msra.mxu0 %v2723_v40  ;;  %2732 = vmatpush1.bf16.msra.mxu1 %v2731_v7  ;;  %v585_v60 = vadd.f32 %v3555_v50, %v3498_v39  ;;  %v600_v10 = vadd.f32 %v3599_v54, %v544_v29  ;;  %v2745_v19 = vpack.c.bf16 %v626_v63, %v618_v12  ;;  %v625_v21 = vmax.f32 %v593_v41, 0.0 }
 0x105   : > { %v2725_v43 = vpack.c.bf16 %v636_v1, %v628_v33  ;;  %v2733_v45 = vpack.c.bf16 %v638_v4, %v630_v51  ;;  %v2727_v46 = vpack.c.bf16 %v635_v6, %v627_v59  ;;  %v2735_v31 = vpack.c.bf16 %v637_v32, %v629_v57  ;;  %1098 = vmatprep.mubr.f32.mxu0 %v4049_v35 }
 0x106   : > { %1187 = vmatprep.mubr.f32.mxu1 %v4049_v35  ;;  %v608_v15 = vadd.f32 %v3530_v48, %v3536_v23  ;;  %v546_v39 = vadd.f32 %v3540_v14, %v3524_v61  ;;  %v632_v13 = vmax.f32 %v600_v10, 0.0  ;;  %v554_v50 = vadd.f32 %v3572_v37, %v3528_v47 }
 0x107   : > { %2726 = vmatprep.subr.bf16.mxu0 %v2725_v43  ;;  %2734 = vmatprep.subr.bf16.mxu1 %v2733_v45  ;;  %v391_v29 = vmul.f32 %v3375_v16, %v3461_v52  ;;  %v399_v1 = vmul.f32 %v3375_v16, %v3463_v53  ;;  %v2739_v4 = vpack.c.bf16 %v623_v58, %v615_v26  ;;  %v617_v6 = vmax.f32 %v585_v60, 0.0 }
 0x108   : > { %2728 = vmatpush1.bf16.msra.mxu0 %v2727_v46  ;;  %2736 = vmatpush1.bf16.msra.mxu1 %v2735_v31  ;;  %v602_v23 = vadd.f32 %v3599_v54, %v546_v39  ;;  %v511_v61 = vmul.f32 %v3391_v27, %v3502_v11  ;;  %v640_v14 = vmax.f32 %v608_v15, 0.0  ;;  %v610_v47 = vadd.f32 %v3530_v48, %v554_v50  ;;  %v3711_v39 = vpop.permute.xlu0 %1399 }
 0x109   : > { %2738 = vmatprep.subr.bf16.mxu0 %v2737_v18  ;;  %2746 = vmatprep.subr.bf16.mxu1 %v2745_v19  ;;  %v519_v37 = vmul.f32 %v3391_v27, %v3421_v62  ;;  %v393_v16 = vmul.f32 %v3377_v17, %v3461_v52  ;;  %v2747_v44 = vpack.c.bf16 %v625_v21, %v617_v6 }
 0x10a   : > { %v634_v8 = vmax.f32 %v602_v23, 0.0  ;;  %v543_v0 = vadd.f32 %v511_v61, %v391_v29  ;;  %v401_v9 = vmul.f32 %v3377_v17, %v3463_v53  ;;  %v2741_v2 = vpack.c.bf16 %v640_v14, %v632_v13 }
 0x10b   : > { %2650 = vmatmul.mubr.msk.f32.vlgmr.msra.gmra.mrb[0].mxu0 %vm1025_vm1, %v3266_v3  ;;  %2654 = vmatmul.mubr.msk.f32.vlgmr.msra.gmra.mrb[0].mxu1 %vm1025_vm1, %v3266_v3  ;;  %v642_v32 = vmax.f32 %v610_v47, 0.0  ;;  %v551_v55 = vadd.f32 %v519_v37, %v399_v1  ;;  %v513_v27 = vmul.f32 %v3393_v28, %v3502_v11  ;;  %v521_v56 = vmul.f32 %v3393_v28, %v3421_v62 }
 0x10c   : > { %2740 = vmatpush1.bf16.msra.mxu0 %v2739_v4  ;;  %2748 = vmatpush1.bf16.msra.mxu1 %v2747_v44  ;;  %v599_v52 = vadd.f32 %v3599_v54, %v543_v0 }
 0x10d   : > { %2742 = vmatprep.subr.bf16.mxu0 %v2741_v2  ;;  %v2749_v17 = vpack.c.bf16 %v642_v32, %v634_v8  ;;  %1104 = vmatprep.mubr.f32.mxu0 %v4049_v35  ;;  %v607_v53 = vadd.f32 %v3530_v48, %v551_v55  ;;  %v545_v38 = vadd.f32 %v513_v27, %v393_v16 }
 0x10e   : > { %1193 = vmatprep.mubr.f32.mxu1 %v4049_v35  ;;  %v631_v24 = vmax.f32 %v599_v52, 0.0  ;;  %v553_v25 = vadd.f32 %v521_v56, %v401_v9 }
 0x10f   : > { %2750 = vmatprep.subr.bf16.mxu1 %v2749_v17  ;;  %2651 = vmatmul.mubr.msk.f32.gmra.mrb[2].mxu0 %vm1025_vm1, %v3270_v5  ;;  %v639_v11 = vmax.f32 %v607_v53, 0.0  ;;  %v601_v40 = vadd.f32 %v3599_v54, %v545_v38  ;;  %v3699_v54 = vpop.permute.xlu1 %1391 }
 0x110   : > { %2655 = vmatmul.mubr.msk.f32.gmra.mrb[2].mxu1 %vm1025_vm1, %v3270_v5  ;;  %v609_v28 = vadd.f32 %v3530_v48, %v553_v25  ;;  %1110 = vmatprep.mubr.f32.mxu0 %v4049_v35  ;;  %v4052_v48 = vld [vmem:[#allocation11_spill] sm:$0xff] }
 0x111   : > { %v2743_v62 = vpack.c.bf16 %v639_v11, %v631_v24  ;;  %v633_v7 = vmax.f32 %v601_v40, 0.0  ;;  %1199 = vmatprep.mubr.f32.mxu1 %v4049_v35 }
 0x112   : > { %v641_v49 = vmax.f32 %v609_v28, 0.0 }
 0x113   : > { %2744 = vmatpush1.bf16.msra.mxu0 %v2743_v62  ;;  %v3703_v26 = vpop.permute.xlu1 %1395 }
 0x114   : > { %v2751_v34 = vpack.c.bf16 %v641_v49, %v633_v7  ;;  %2652 = vmatmul.mubr.msk.f32.gmra.mrb[4].mxu0 %vm1025_vm1, %v3283_v20  ;;  %2656 = vmatmul.mubr.msk.f32.gmra.mrb[4].mxu1 %vm1025_vm1, %v3283_v20 }
 0x115   : > { %1116 = vmatprep.mubr.f32.mxu0 %v4049_v35  ;;  %1205 = vmatprep.mubr.f32.mxu1 %v4049_v35 }
 0x116   : > { %2752 = vmatpush1.bf16.msra.mxu1 %v2751_v34 }
 0x117   : > { %v3713_v37 = vpop.permute.xlu1 %1403 }
 0x118   : > { %2653 = vmatmul.mubr.msk.f32.gmra.mrb[6].mxu0 %vm1025_vm1, %v3289_v22  ;;  %2657 = vmatmul.mubr.msk.f32.gmra.mrb[6].mxu1 %vm1025_vm1, %v3289_v22 }
 0x119   : > { %1276 = vmatprep.mubr.f32.mxu0 %v4049_v35  ;;  %1365 = vmatprep.mubr.f32.mxu1 %v4049_v35 }
 0x11c   : > { %2658 = vmatmul.mubr.msk.f32.vlgmr.msra.gmra.mrb[8].mxu0 %vm1025_vm1, %v3266_v3  ;;  %2662 = vmatmul.mubr.msk.f32.vlgmr.msra.gmra.mrb[8].mxu1 %vm1025_vm1, %v3266_v3  ;;  %v3080_v3 = vmov 2  }
 0x11d   : > { %1282 = vmatprep.mubr.f32.mxu0 %v4049_v35  ;;  %1371 = vmatprep.mubr.f32.mxu1 %v4049_v35 }
 0x11e   : > { %2928 = vset.pattern.permute.xlu1 %v3080_v3  ;;  %2929 = vset.pattern.permute.xlu0 %v3080_v3 }
 0x11f   : > { %1476 = vperm.xlu1 %2928, %v3306_v30  }
 0x120   : > { %2659 = vmatmul.mubr.msk.f32.gmra.mrb[10].mxu0 %vm1025_vm1, %v3270_v5  ;;  %2663 = vmatmul.mubr.msk.f32.gmra.mrb[10].mxu1 %vm1025_vm1, %v3270_v5  ;;  %v4050_v5 = vld [vmem:[#allocation12_spill] sm:$0xff] }
 0x121   : > { %1288 = vmatprep.mubr.f32.mxu0 %v4049_v35  ;;  %1377 = vmatprep.mubr.f32.mxu1 %v4049_v35 }
 0x122   : > { %1480 = vperm.xlu0 %2929, %v4050_v5  }
 0x124   : > { %2660 = vmatmul.mubr.msk.f32.gmra.mrb[12].mxu0 %vm1025_vm1, %v3283_v20  ;;  %2664 = vmatmul.mubr.msk.f32.gmra.mrb[12].mxu1 %vm1025_vm1, %v3283_v20  ;;  %v4051_v20 = vld [vmem:[#allocation13_spill] sm:$0xff] }
 0x125   : > { %1294 = vmatprep.mubr.f32.mxu0 %v4049_v35  ;;  %1383 = vmatprep.mubr.f32.mxu1 %v4049_v35 }
 0x126   : > { %1484 = vperm.xlu1 %2928, %v4051_v20  }
 0x128   : > { %2661 = vmatmul.mubr.msk.f32.gmra.mrb[14].mxu0 %vm1025_vm1, %v3289_v22  ;;  %2665 = vmatmul.mubr.msk.f32.gmra.mrb[14].mxu1 %vm1025_vm1, %v3289_v22 }
 0x129   : > { %1567 = vmatprep.mubr.f32.mxu0 %v4049_v35  ;;  %1656 = vmatprep.mubr.f32.mxu1 %v4049_v35 }
 0x12a   : > { %1488 = vperm.xlu1 %2928, %v4052_v48  }
 0x1de   : > { %v1100_v36 = vpop.f32.mrb[0].mxu0  ;;  %v1189_v42 = vpop.f32.mrb[0].mxu1 }
 0x1df   : > { %v1102_v22 = vpop.f32.mrb[1].mxu0  ;;  %v1191_v18 = vpop.f32.mrb[1].mxu1  ;;  %v1406_v12 = vadd.f32 %v3699_v54, %v1100_v36  ;;  %v1408_v63 = vadd.f32 %v3699_v54, %v1189_v42 }
 0x1e0   : > { %v1407_v30 = vadd.f32 %v3699_v54, %v1102_v22  ;;  %v1409_v51 = vadd.f32 %v3699_v54, %v1191_v18 }
 0x1e1   : > { %v1438_v43 = vmax.f32 %v1406_v12, 0.0  ;;  %v1440_v31 = vmax.f32 %v1408_v63, 0.0 }
 0x1e2   : > { %v1106_v33 = vpop.f32.mrb[2].mxu0  ;;  %v1439_v19 = vmax.f32 %v1407_v30, 0.0  ;;  %v1441_v13 = vmax.f32 %v1409_v51, 0.0 }
 0x1e3   : > { %v1414_v59 = vadd.f32 %v3703_v26, %v1106_v33  ;;  %v1195_v57 = vpop.f32.mrb[2].mxu1  ;;  %v1108_v58 = vpop.f32.mrb[3].mxu0 }
 0x1e4   : > { %v1416_v60 = vadd.f32 %v3703_v26, %v1195_v57  ;;  %v1415_v41 = vadd.f32 %v3703_v26, %v1108_v58  ;;  %v1197_v10 = vpop.f32.mrb[3].mxu1  ;;  %v3729_v58 = vld [vmem:[#allocation5 + $0x40] sm:$0xff] }
 0x1e5   : > { %v1446_v45 = vmax.f32 %v1414_v59, 0.0  ;;  %v1417_v46 = vadd.f32 %v3703_v26, %v1197_v10 }
 0x1e6   : > { %v1448_v21 = vmax.f32 %v1416_v60, 0.0  ;;  %v1447_v15 = vmax.f32 %v1415_v41, 0.0 }
 0x1e7   : > { %v2755_v50 = vpack.c.bf16 %v1446_v45, %v1438_v43  ;;  %v1449_v29 = vmax.f32 %v1417_v46, 0.0  ;;  %v1112_v1 = vpop.f32.mrb[4].mxu0  ;;  %v1201_v4 = vpop.f32.mrb[4].mxu1 }
 0x1e8   : > { %v2763_v6 = vpack.c.bf16 %v1448_v21, %v1440_v31  ;;  %v2753_v23 = vpack.c.bf16 %v1447_v15, %v1439_v19  ;;  %v1114_v61 = vpop.f32.mrb[5].mxu0  ;;  %v1203_v14 = vpop.f32.mrb[5].mxu1  ;;  %v1422_v16 = vadd.f32 %v3711_v39, %v1112_v1  ;;  %v1424_v44 = vadd.f32 %v3711_v39, %v1201_v4  ;;  %v1472_v4 = vld [vmem:[#allocation5 + $0x48] sm:$0xff] }
 0x1e9   : > { %v2761_v47 = vpack.c.bf16 %v1449_v29, %v1441_v13  ;;  %v1423_v8 = vadd.f32 %v3711_v39, %v1114_v61  ;;  %v1425_v0 = vadd.f32 %v3711_v39, %v1203_v14 }
 0x1ea   : > { %2754 = vmatprep.subr.bf16.mxu0 %v2753_v23  ;;  %v1454_v53 = vmax.f32 %v1422_v16, 0.0  ;;  %v1456_v38 = vmax.f32 %v1424_v44, 0.0 }
 0x1eb   : > { %v1118_v9 = vpop.f32.mrb[6].mxu0  ;;  %v1207_v2 = vpop.f32.mrb[6].mxu1  ;;  %2762 = vmatprep.subr.bf16.mxu1 %v2761_v47  ;;  %2756 = vmatpush1.bf16.msra.mxu0 %v2755_v50  ;;  %v1455_v11 = vmax.f32 %v1423_v8, 0.0  ;;  %v1457_v40 = vmax.f32 %v1425_v0, 0.0 }
 0x1ec   : > { %v1430_v32 = vadd.f32 %v3713_v37, %v1118_v9  ;;  %v1432_v55 = vadd.f32 %v3713_v37, %v1207_v2  ;;  %v1120_v27 = vpop.f32.mrb[7].mxu0  ;;  %v1209_v52 = vpop.f32.mrb[7].mxu1  ;;  %2764 = vmatpush1.bf16.msra.mxu1 %v2763_v6 }
 0x1ed   : > { %v1431_v56 = vadd.f32 %v3713_v37, %v1120_v27  ;;  %v1433_v17 = vadd.f32 %v3713_v37, %v1209_v52 }
 0x1ee   : > { %v1462_v24 = vmax.f32 %v1430_v32, 0.0  ;;  %v1464_v25 = vmax.f32 %v1432_v55, 0.0  ;;  %v1473_v55 = vld [vmem:[#allocation5 + $0x50] sm:$0xff] }
 0x1ef   : > { %v1463_v28 = vmax.f32 %v1431_v56, 0.0  ;;  %v1465_v62 = vmax.f32 %v1433_v17, 0.0  ;;  %v1278_v7 = vpop.f32.mrb[8].mxu0  ;;  %v1367_v49 = vpop.f32.mrb[8].mxu1 }
 0x1f0   : > { %v2759_v34 = vpack.c.bf16 %v1462_v24, %v1454_v53  ;;  %v2767_v3 = vpack.c.bf16 %v1464_v25, %v1456_v38  ;;  %v1280_v5 = vpop.f32.mrb[9].mxu0  ;;  %v1369_v20 = vpop.f32.mrb[9].mxu1  ;;  %v1410_v42 = vadd.f32 %v3699_v54, %v1278_v7  ;;  %v1412_v22 = vadd.f32 %v3699_v54, %v1367_v49 }
 0x1f1   : > { %v2757_v48 = vpack.c.bf16 %v1463_v28, %v1455_v11  ;;  %v2765_v36 = vpack.c.bf16 %v1465_v62, %v1457_v40  ;;  %v1411_v18 = vadd.f32 %v3699_v54, %v1280_v5  ;;  %v1413_v12 = vadd.f32 %v3699_v54, %v1369_v20  ;;  %v1474_v28 = vld [vmem:[#allocation5 + $0x58] sm:$0xff]  ;;  %v2937_v5 = vld [vmem:[%s4018_s3 + $0x10] sm:$0xff] }
 0x1f2   : > { %v1442_v10 = vmax.f32 %v1410_v42, 0.0  ;;  %v1444_v54 = vmax.f32 %v1412_v22, 0.0  ;;  %v3081_v49 = vmov 3   ;;  %v2938_v20 = vld [vmem:[%s4018_s3 + $0x18] sm:$0xff]  ;;  %v4053_v42 = vmov 0   ;;  %v2315_v22 = vld [vmem:[#allocation5 + $0x90] sm:$0xff] }
 0x1f3   : > { %v1284_v63 = vpop.f32.mrb[10].mxu0  ;;  %v1373_v30 = vpop.f32.mrb[10].mxu1  ;;  %2758 = vmatprep.subr.bf16.mxu0 %v2757_v48  ;;  %2766 = vmatprep.subr.bf16.mxu1 %v2765_v36  ;;  %v1443_v46 = vmax.f32 %v1411_v18, 0.0  ;;  %v1445_v31 = vmax.f32 %v1413_v12, 0.0  ;;  %v2313_v48 = vld [vmem:[#allocation5 + $0x80] sm:$0xff]  ;;  %v2314_v36 = vld [vmem:[#allocation5 + $0x88] sm:$0xff] }
 0x1f4   : > { %v1418_v33 = vadd.f32 %v3703_v26, %v1284_v63  ;;  %v1420_v51 = vadd.f32 %v3703_v26, %v1373_v30  ;;  %v1286_v59 = vpop.f32.mrb[11].mxu0  ;;  %v1375_v57 = vpop.f32.mrb[11].mxu1  ;;  %2760 = vmatpush1.bf16.msra.mxu0 %v2759_v34  ;;  %2768 = vmatpush1.bf16.msra.mxu1 %v2767_v3  ;;  %v2935_v34 = vld [vmem:[%s4018_s3 + $0x8] sm:$0xff]  ;;  %v2936_v3 = vld [vmem:[%s4018_s3] sm:$0xff]  ;;  %v3082_v12 = vmov 4   ;;  %v2316_v63 = vld [vmem:[#allocation5 + $0x98] sm:$0xff] }
 0x1f5   : > { %v1419_v60 = vadd.f32 %v3703_v26, %v1286_v59  ;;  %v1421_v41 = vadd.f32 %v3703_v26, %v1375_v57  ;;  %2931 = vset.pattern.permute.xlu1 %v3081_v49  ;;  %2930 = vset.pattern.permute.xlu0 %v3081_v49  ;;  %v2441_v18 = vld [vmem:[%s4018_s3] sm:$0x1]  ;;  %v3794_v30 = vpop.permute.xlu1 %1476 }
 0x1f6   : > { %v1450_v43 = vmax.f32 %v1418_v33, 0.0  ;;  %v1452_v45 = vmax.f32 %v1420_v51, 0.0  ;;  %1901 = vperm.xlu1 %2931, %v2935_v34   ;;  %1897 = vperm.xlu0 %2930, %v2936_v3  }
 0x1f7   : > { %v1451_v19 = vmax.f32 %v1419_v60, 0.0  ;;  %v1453_v21 = vmax.f32 %v1421_v41, 0.0  ;;  %v1290_v15 = vpop.f32.mrb[12].mxu0  ;;  %v1379_v13 = vpop.f32.mrb[12].mxu1  ;;  %2666 = vmatmul.mubr.msk.f32.vlgmr.msra.gmra.mrb[16].mxu0 %vm1025_vm1, %v3729_v58  ;;  %2670 = vmatmul.mubr.msk.f32.vlgmr.msra.gmra.mrb[16].mxu1 %vm1025_vm1, %v3729_v58 }
 0x1f8   : > { %v2771_v50 = vpack.c.bf16 %v1450_v43, %v1442_v10  ;;  %v2779_v29 = vpack.c.bf16 %v1452_v45, %v1444_v54  ;;  %v1292_v1 = vpop.f32.mrb[13].mxu0  ;;  %v1381_v26 = vpop.f32.mrb[13].mxu1  ;;  %1573 = vmatprep.mubr.f32.mxu0 %v4049_v35  ;;  %1662 = vmatprep.mubr.f32.mxu1 %v4049_v35  ;;  %v1426_v61 = vadd.f32 %v3711_v39, %v1290_v15 }
 0x1f9   : > { %v2769_v6 = vpack.c.bf16 %v1451_v19, %v1443_v46  ;;  %v2777_v23 = vpack.c.bf16 %v1453_v21, %v1445_v31  ;;  %v1428_v14 = vadd.f32 %v3711_v39, %v1379_v13  ;;  %v1427_v47 = vadd.f32 %v3711_v39, %v1292_v1  ;;  %v3800_v10 = vpop.permute.xlu1 %1484 }
 0x1fa   : > { %v1429_v16 = vadd.f32 %v3711_v39, %v1381_v26  ;;  %v1458_v39 = vmax.f32 %v1426_v61, 0.0  ;;  %1905 = vperm.xlu1 %2931, %v2937_v5   ;;  %1909 = vperm.xlu0 %2930, %v2938_v20  }
 0x1fb   : > { %v1296_v44 = vpop.f32.mrb[14].mxu0  ;;  %v1385_v8 = vpop.f32.mrb[14].mxu1  ;;  %2667 = vmatmul.mubr.msk.f32.gmra.mrb[18].mxu0 %vm1025_vm1, %v1472_v4  ;;  %2671 = vmatmul.mubr.msk.f32.gmra.mrb[18].mxu1 %vm1025_vm1, %v1472_v4  ;;  %v1460_v56 = vmax.f32 %v1428_v14, 0.0  ;;  %v1459_v38 = vmax.f32 %v1427_v47, 0.0 }
 0x1fc   : > { %v1434_v0 = vadd.f32 %v3713_v37, %v1296_v44  ;;  %v1436_v9 = vadd.f32 %v3713_v37, %v1385_v8  ;;  %2770 = vmatprep.subr.bf16.mxu0 %v2769_v6  ;;  %2778 = vmatprep.subr.bf16.mxu1 %v2777_v23  ;;  %v1298_v2 = vpop.f32.mrb[15].mxu0  ;;  %v1387_v32 = vpop.f32.mrb[15].mxu1  ;;  %v1461_v24 = vmax.f32 %v1429_v16, 0.0 }
 0x1fd   : > { %v1435_v27 = vadd.f32 %v3713_v37, %v1298_v2  ;;  %v1437_v52 = vadd.f32 %v3713_v37, %v1387_v32  ;;  %2772 = vmatpush1.bf16.msra.mxu0 %v2771_v50  ;;  %2780 = vmatpush1.bf16.msra.mxu1 %v2779_v29 }
 0x1fe   : > { %v1466_v17 = vmax.f32 %v1434_v0, 0.0  ;;  %v1468_v53 = vmax.f32 %v1436_v9, 0.0  ;;  %1579 = vmatprep.mubr.f32.mxu0 %v4049_v35  ;;  %1668 = vmatprep.mubr.f32.mxu1 %v4049_v35 }
 0x1ff   : > { %v1467_v25 = vmax.f32 %v1435_v27, 0.0  ;;  %v1469_v11 = vmax.f32 %v1437_v52, 0.0  ;;  %2668 = vmatmul.mubr.msk.f32.gmra.mrb[20].mxu0 %vm1025_vm1, %v1473_v55  ;;  %2672 = vmatmul.mubr.msk.f32.gmra.mrb[20].mxu1 %vm1025_vm1, %v1473_v55  ;;  %v3810_v52 = vpop.permute.xlu1 %1488 }
 0x200   : > { %v2775_v40 = vpack.c.bf16 %v1466_v17, %v1458_v39  ;;  %v2783_v37 = vpack.c.bf16 %v1468_v53, %v1460_v56  ;;  %1585 = vmatprep.mubr.f32.mxu0 %v4049_v35  ;;  %1674 = vmatprep.mubr.f32.mxu1 %v4049_v35 }
 0x201   : > { %v2773_v62 = vpack.c.bf16 %v1467_v25, %v1459_v38  ;;  %v2781_v7 = vpack.c.bf16 %v1469_v11, %v1461_v24  ;;  %2932 = vset.pattern.permute.xlu1 %v4053_v42  ;;  %2933 = vset.pattern.permute.xlu0 %v4053_v42 }
 0x202   : > { %2319 = vperm.xlu1 %2932, %v2313_v48   ;;  %2324 = vperm.xlu0 %2933, %v2314_v36  }
 0x203   : > { %2669 = vmatmul.mubr.msk.f32.gmra.mrb[22].mxu0 %vm1025_vm1, %v1474_v28  ;;  %2673 = vmatmul.mubr.msk.f32.gmra.mrb[22].mxu1 %vm1025_vm1, %v1474_v28 }
 0x204   : > { %2774 = vmatprep.subr.bf16.mxu0 %v2773_v62  ;;  %2782 = vmatprep.subr.bf16.mxu1 %v2781_v7 }
 0x205   : > { %2776 = vmatpush1.bf16.msra.mxu0 %v2775_v40  ;;  %2784 = vmatpush1.bf16.msra.mxu1 %v2783_v37 }
 0x206   : > { %1745 = vmatprep.mubr.f32.mxu0 %v4049_v35  ;;  %1834 = vmatprep.mubr.f32.mxu1 %v4049_v35 }
 0x207   : > { %2329 = vperm.xlu1 %2932, %v2315_v22   ;;  %2934 = vset.pattern.permute.xlu0 %v3082_v12 }
 0x208   : > { %2674 = vmatmul.mubr.msk.f32.vlgmr.msra.gmra.mrb[24].mxu0 %vm1025_vm1, %v3729_v58  ;;  %2678 = vmatmul.mubr.msk.f32.vlgmr.msra.gmra.mrb[24].mxu1 %vm1025_vm1, %v3729_v58  ;;  %v3796_v58 = vpop.permute.xlu0 %1480 }
 0x209   : > { %1751 = vmatprep.mubr.f32.mxu0 %v4049_v35  ;;  %1840 = vmatprep.mubr.f32.mxu1 %v4049_v35 }
 0x20a   : > { %2444 = vperm.xlu0 %2934, %v2441_v18  }
 0x20b   : > { %2334 = vperm.xlu1 %2932, %v2316_v63  }
 0x20c   : > { %2675 = vmatmul.mubr.msk.f32.gmra.mrb[26].mxu0 %vm1025_vm1, %v1472_v4  ;;  %2679 = vmatmul.mubr.msk.f32.gmra.mrb[26].mxu1 %vm1025_vm1, %v1472_v4 }
 0x20d   : > { %1757 = vmatprep.mubr.f32.mxu0 %v4049_v35  ;;  %1846 = vmatprep.mubr.f32.mxu1 %v4049_v35 }
 0x210   : > { %2676 = vmatmul.mubr.msk.f32.gmra.mrb[28].mxu0 %vm1025_vm1, %v1473_v55  ;;  %2680 = vmatmul.mubr.msk.f32.gmra.mrb[28].mxu1 %vm1025_vm1, %v1473_v55 }
 0x211   : > { %1763 = vmatprep.mubr.f32.mxu0 %v4049_v35  ;;  %1852 = vmatprep.mubr.f32.mxu1 %v4049_v35 }
 0x214   : > { %2677 = vmatmul.mubr.msk.f32.gmra.mrb[30].mxu0 %vm1025_vm1, %v1474_v28  ;;  %2681 = vmatmul.mubr.msk.f32.gmra.mrb[30].mxu1 %vm1025_vm1, %v1474_v28 }
 0x215   : > { %1988 = vmatprep.mubr.f32.mxu0 %v4049_v35  ;;  %2077 = vmatprep.mubr.f32.mxu1 %v4049_v35 }
 0x2ca   : > { %v1569_v33 = vpop.f32.mrb[16].mxu0  ;;  %v1658_v51 = vpop.f32.mrb[16].mxu1 }
 0x2cb   : > { %v1571_v59 = vpop.f32.mrb[17].mxu0  ;;  %v1660_v57 = vpop.f32.mrb[17].mxu1  ;;  %v1570_v60 = vadd.f32 %v1569_v33, %v3794_v30  ;;  %v1659_v41 = vadd.f32 %v1658_v51, %v3794_v30 }
 0x2cc   : > { %v1572_v54 = vadd.f32 %v1571_v59, %v3794_v30  ;;  %v1661_v43 = vadd.f32 %v1660_v57, %v3794_v30 }
 0x2cd   : > { %v1859_v29 = vmax.f32 %v1570_v60, 0.0  ;;  %v1861_v1 = vmax.f32 %v1659_v41, 0.0 }
 0x2ce   : > { %v1575_v45 = vpop.f32.mrb[18].mxu0  ;;  %v1664_v46 = vpop.f32.mrb[18].mxu1  ;;  %v1860_v6 = vmax.f32 %v1572_v54, 0.0  ;;  %v1862_v23 = vmax.f32 %v1661_v43, 0.0  ;;  %v3822_v43 = vld [vmem:[#allocation5 + $0x60] sm:$0xff] }
 0x2cf   : > { %v1576_v31 = vadd.f32 %v1575_v45, %v3796_v58  ;;  %v1665_v19 = vadd.f32 %v1664_v46, %v3796_v58  ;;  %v1577_v21 = vpop.f32.mrb[19].mxu0  ;;  %v1666_v15 = vpop.f32.mrb[19].mxu1 }
 0x2d0   : > { %v1578_v13 = vadd.f32 %v1577_v21, %v3796_v58  ;;  %v1667_v50 = vadd.f32 %v1666_v15, %v3796_v58 }
 0x2d1   : > { %v1867_v26 = vmax.f32 %v1576_v31, 0.0  ;;  %v1869_v4 = vmax.f32 %v1665_v19, 0.0 }
 0x2d2   : > { %v1868_v61 = vmax.f32 %v1578_v13, 0.0  ;;  %v1870_v14 = vmax.f32 %v1667_v50, 0.0  ;;  %v1581_v47 = vpop.f32.mrb[20].mxu0  ;;  %v1670_v16 = vpop.f32.mrb[20].mxu1 }
 0x2d3   : > { %v2787_v44 = vpack.c.bf16 %v1867_v26, %v1859_v29  ;;  %v2795_v8 = vpack.c.bf16 %v1869_v4, %v1861_v1  ;;  %v1583_v0 = vpop.f32.mrb[21].mxu0  ;;  %v1672_v9 = vpop.f32.mrb[21].mxu1  ;;  %v1582_v55 = vadd.f32 %v1581_v47, %v3800_v10  ;;  %v1671_v27 = vadd.f32 %v1670_v16, %v3800_v10  ;;  %v3832_v1 = vld [vmem:[#allocation5 + $0x68] sm:$0xff] }
 0x2d4   : > { %v2785_v2 = vpack.c.bf16 %v1868_v61, %v1860_v6  ;;  %v2793_v32 = vpack.c.bf16 %v1870_v14, %v1862_v23  ;;  %v1584_v39 = vadd.f32 %v1583_v0, %v3800_v10  ;;  %v1673_v56 = vadd.f32 %v1672_v9, %v3800_v10 }
 0x2d5   : > { %v1875_v28 = vmax.f32 %v1582_v55, 0.0  ;;  %v1877_v62 = vmax.f32 %v1671_v27, 0.0 }
 0x2d6   : > { %v1587_v17 = vpop.f32.mrb[22].mxu0  ;;  %v1676_v53 = vpop.f32.mrb[22].mxu1  ;;  %2786 = vmatprep.subr.bf16.mxu0 %v2785_v2  ;;  %2794 = vmatprep.subr.bf16.mxu1 %v2793_v32  ;;  %v1876_v34 = vmax.f32 %v1584_v39, 0.0  ;;  %v1878_v3 = vmax.f32 %v1673_v56, 0.0  ;;  %v1894_v56 = vld [vmem:[#allocation5 + $0x70] sm:$0xff] }
 0x2d7   : > { %v1588_v38 = vadd.f32 %v1587_v17, %v3810_v52  ;;  %v1677_v24 = vadd.f32 %v1676_v53, %v3810_v52  ;;  %v1589_v25 = vpop.f32.mrb[23].mxu0  ;;  %v1678_v11 = vpop.f32.mrb[23].mxu1  ;;  %2788 = vmatpush1.bf16.msra.mxu0 %v2787_v44  ;;  %2796 = vmatpush1.bf16.msra.mxu1 %v2795_v8 }
 0x2d8   : > { %v1590_v40 = vadd.f32 %v1589_v25, %v3810_v52  ;;  %v1679_v37 = vadd.f32 %v1678_v11, %v3810_v52 }
 0x2d9   : > { %v1883_v7 = vmax.f32 %v1588_v38, 0.0  ;;  %v1885_v49 = vmax.f32 %v1677_v24, 0.0 }
 0x2da   : > { %v1884_v5 = vmax.f32 %v1590_v40, 0.0  ;;  %v1886_v20 = vmax.f32 %v1679_v37, 0.0 }
 0x2db   : > { %v2791_v48 = vpack.c.bf16 %v1883_v7, %v1875_v28  ;;  %v2799_v36 = vpack.c.bf16 %v1885_v49, %v1877_v62  ;;  %v1747_v42 = vpop.f32.mrb[24].mxu0  ;;  %v1836_v22 = vpop.f32.mrb[24].mxu1 }
 0x2dc   : > { %v2789_v18 = vpack.c.bf16 %v1884_v5, %v1876_v34  ;;  %v2797_v12 = vpack.c.bf16 %v1886_v20, %v1878_v3  ;;  %v1749_v63 = vpop.f32.mrb[25].mxu0  ;;  %v1838_v33 = vpop.f32.mrb[25].mxu1  ;;  %v1748_v51 = vadd.f32 %v1747_v42, %v3794_v30  ;;  %v1837_v59 = vadd.f32 %v1836_v22, %v3794_v30 }
 0x2dd   : > { %v1750_v57 = vadd.f32 %v1749_v63, %v3794_v30  ;;  %v1839_v60 = vadd.f32 %v1838_v33, %v3794_v30  ;;  %v3878_v42 = vpop.permute.xlu0 %1897 }
 0x2de   : > { %2790 = vmatprep.subr.bf16.mxu0 %v2789_v18  ;;  %2798 = vmatprep.subr.bf16.mxu1 %v2797_v12  ;;  %v1863_v13 = vmax.f32 %v1748_v51, 0.0  ;;  %v1865_v50 = vmax.f32 %v1837_v59, 0.0 }
 0x2df   : > { %v1753_v41 = vpop.f32.mrb[26].mxu0  ;;  %v1842_v54 = vpop.f32.mrb[26].mxu1  ;;  %2792 = vmatpush1.bf16.msra.mxu0 %v2791_v48  ;;  %2800 = vmatpush1.bf16.msra.mxu1 %v2799_v36  ;;  %v1864_v26 = vmax.f32 %v1750_v57, 0.0  ;;  %v1866_v4 = vmax.f32 %v1839_v60, 0.0 }
 0x2e0   : > { %v1754_v45 = vadd.f32 %v1753_v41, %v3796_v58  ;;  %v1843_v46 = vadd.f32 %v1842_v54, %v3796_v58  ;;  %v1755_v31 = vpop.f32.mrb[27].mxu0  ;;  %v1844_v19 = vpop.f32.mrb[27].mxu1 }
 0x2e1   : > { %v1756_v21 = vadd.f32 %v1755_v31, %v3796_v58  ;;  %v1845_v15 = vadd.f32 %v1844_v19, %v3796_v58  ;;  %v3876_v36 = vpop.permute.xlu1 %1901  ;;  %v3882_v18 = vpop.permute.xlu0 %1909 }
 0x2e2   : > { %v1871_v29 = vmax.f32 %v1754_v45, 0.0  ;;  %v1873_v30 = vmax.f32 %v1843_v46, 0.0  ;;  %2682 = vmatmul.mubr.msk.f32.vlgmr.msra.gmra.mrb[32].mxu0 %vm1025_vm1, %v3822_v43  ;;  %2686 = vmatmul.mubr.msk.f32.vlgmr.msra.gmra.mrb[32].mxu1 %vm1025_vm1, %v3822_v43 }
 0x2e3   : > { %v1872_v6 = vmax.f32 %v1756_v21, 0.0  ;;  %v1874_v23 = vmax.f32 %v1845_v15, 0.0  ;;  %v1759_v61 = vpop.f32.mrb[28].mxu0  ;;  %v1848_v14 = vpop.f32.mrb[28].mxu1  ;;  %1994 = vmatprep.mubr.f32.mxu0 %v4049_v35  ;;  %2083 = vmatprep.mubr.f32.mxu1 %v4049_v35 }
 0x2e4   : > { %v2803_v58 = vpack.c.bf16 %v1871_v29, %v1863_v13  ;;  %v2811_v47 = vpack.c.bf16 %v1873_v30, %v1865_v50  ;;  %v1761_v16 = vpop.f32.mrb[29].mxu0  ;;  %v1850_v44 = vpop.f32.mrb[29].mxu1  ;;  %v1760_v9 = vadd.f32 %v1759_v61, %v3800_v10  ;;  %v1849_v2 = vadd.f32 %v1848_v14, %v3800_v10 }
 0x2e5   : > { %v2801_v8 = vpack.c.bf16 %v1872_v6, %v1864_v26  ;;  %v2809_v0 = vpack.c.bf16 %v1874_v23, %v1866_v4  ;;  %v1762_v32 = vadd.f32 %v1761_v16, %v3800_v10  ;;  %v1851_v55 = vadd.f32 %v1850_v44, %v3800_v10  ;;  %v3880_v22 = vpop.permute.xlu1 %1905 }
 0x2e6   : > { %2683 = vmatmul.mubr.msk.f32.gmra.mrb[34].mxu0 %vm1025_vm1, %v3832_v1  ;;  %2687 = vmatmul.mubr.msk.f32.gmra.mrb[34].mxu1 %vm1025_vm1, %v3832_v1  ;;  %v1879_v10 = vmax.f32 %v1760_v9, 0.0  ;;  %v1881_v40 = vmax.f32 %v1849_v2, 0.0  ;;  %v3083_v26 = vmov 1966171168  }
 0x2e7   : > { %v1765_v27 = vpop.f32.mrb[30].mxu0  ;;  %v1854_v39 = vpop.f32.mrb[30].mxu1  ;;  %2802 = vmatprep.subr.bf16.mxu0 %v2801_v8  ;;  %2810 = vmatprep.subr.bf16.mxu1 %v2809_v0  ;;  %v1880_v62 = vmax.f32 %v1762_v32, 0.0  ;;  %v1882_v7 = vmax.f32 %v1851_v55, 0.0  ;;  %v3896_v4 = vunpack.c.l.s4 %v3083_v26 }
 0x2e8   : > { %v1766_v17 = vadd.f32 %v1765_v27, %v3810_v52  ;;  %v1855_v53 = vadd.f32 %v1854_v39, %v3810_v52  ;;  %v1767_v38 = vpop.f32.mrb[31].mxu0  ;;  %v1856_v24 = vpop.f32.mrb[31].mxu1  ;;  %2804 = vmatpush1.bf16.msra.mxu0 %v2803_v58  ;;  %2812 = vmatpush1.bf16.msra.mxu1 %v2811_v47 }
 0x2e9   : > { %v1768_v25 = vadd.f32 %v1767_v38, %v3810_v52  ;;  %v1857_v11 = vadd.f32 %v1856_v24, %v3810_v52  ;;  %2000 = vmatprep.mubr.f32.mxu0 %v4049_v35  ;;  %2089 = vmatprep.mubr.f32.mxu1 %v4049_v35  ;;  %v1895_v52 = vld [vmem:[#allocation5 + $0x78] sm:$0xff] }
 0x2ea   : > { %v1887_v37 = vmax.f32 %v1766_v17, 0.0  ;;  %v1889_v28 = vmax.f32 %v1855_v53, 0.0  ;;  %2684 = vmatmul.mubr.msk.f32.gmra.mrb[36].mxu0 %vm1025_vm1, %v1894_v56  ;;  %2688 = vmatmul.mubr.msk.f32.gmra.mrb[36].mxu1 %vm1025_vm1, %v1894_v56 }
 0x2eb   : > { %v1888_v49 = vmax.f32 %v1768_v25, 0.0  ;;  %v1890_v34 = vmax.f32 %v1857_v11, 0.0  ;;  %2006 = vmatprep.mubr.f32.mxu0 %v4049_v35  ;;  %2095 = vmatprep.mubr.f32.mxu1 %v4049_v35 }
 0x2ec   : > { %v2807_v3 = vpack.c.bf16 %v1887_v37, %v1879_v10  ;;  %v2815_v5 = vpack.c.bf16 %v1889_v28, %v1881_v40 }
 0x2ed   : > { %v2805_v20 = vpack.c.bf16 %v1888_v49, %v1880_v62  ;;  %v2813_v48 = vpack.c.bf16 %v1890_v34, %v1882_v7 }
 0x2ee   : > { %2685 = vmatmul.mubr.msk.f32.gmra.mrb[38].mxu0 %vm1025_vm1, %v1895_v52  ;;  %2689 = vmatmul.mubr.msk.f32.gmra.mrb[38].mxu1 %vm1025_vm1, %v1895_v52 }
 0x2ef   : > { %2806 = vmatprep.subr.bf16.mxu0 %v2805_v20  ;;  %2814 = vmatprep.subr.bf16.mxu1 %v2813_v48 }
 0x2f0   : > { %2808 = vmatpush1.bf16.msra.mxu0 %v2807_v3  ;;  %2816 = vmatpush1.bf16.msra.mxu1 %v2815_v5 }
 0x2f1   : > { %2166 = vmatprep.mubr.f32.mxu0 %v4049_v35  ;;  %2255 = vmatprep.mubr.f32.mxu1 %v4049_v35 }
 0x2f3   : > { %2690 = vmatmul.mubr.msk.f32.vlgmr.msra.gmra.mrb[40].mxu0 %vm1025_vm1, %v3822_v43  ;;  %2694 = vmatmul.mubr.msk.f32.vlgmr.msra.gmra.mrb[40].mxu1 %vm1025_vm1, %v3822_v43  ;;  %v3888_v43 = vpop.permute.xlu1 %2319 }
 0x2f4   : > { %2172 = vmatprep.mubr.f32.mxu0 %v4049_v35  ;;  %2261 = vmatprep.mubr.f32.mxu1 %v4049_v35 }
 0x2f7   : > { %2691 = vmatmul.mubr.msk.f32.gmra.mrb[42].mxu0 %vm1025_vm1, %v3832_v1  ;;  %2695 = vmatmul.mubr.msk.f32.gmra.mrb[42].mxu1 %vm1025_vm1, %v3832_v1  ;;  %v3894_v1 = vpop.permute.xlu0 %2324  ;;  %v3900_v58 = vpop.permute.xlu1 %2329 }
 0x2f8   : > { %2178 = vmatprep.mubr.f32.mxu0 %v4049_v35  ;;  %2267 = vmatprep.mubr.f32.mxu1 %v4049_v35 }
 0x2fb   : > { %2692 = vmatmul.mubr.msk.f32.gmra.mrb[44].mxu0 %vm1025_vm1, %v1894_v56  ;;  %2696 = vmatmul.mubr.msk.f32.gmra.mrb[44].mxu1 %vm1025_vm1, %v1894_v56 }
 0x2fc   : > { %2184 = vmatprep.mubr.f32.mxu0 %v4049_v35  ;;  %2273 = vmatprep.mubr.f32.mxu1 %v4049_v35 }
 0x2ff   : > { %2693 = vmatmul.mubr.msk.f32.gmra.mrb[46].mxu0 %vm1025_vm1, %v1895_v52  ;;  %2697 = vmatmul.mubr.msk.f32.gmra.mrb[46].mxu1 %vm1025_vm1, %v1895_v52 }
 0x3b5   : > { %v1990_v12 = vpop.f32.mrb[32].mxu0  ;;  %v2079_v63 = vpop.f32.mrb[32].mxu1 }
 0x3b6   : > { %v1991_v33 = vadd.f32 %v1990_v12, %v3878_v42  ;;  %v2080_v51 = vadd.f32 %v2079_v63, %v3878_v42  ;;  %v1992_v59 = vpop.f32.mrb[33].mxu0  ;;  %v2081_v35 = vpop.f32.mrb[33].mxu1 }
 0x3b7   : > { %v1993_v57 = vadd.f32 %v1992_v59, %v3878_v42  ;;  %v2082_v60 = vadd.f32 %v2081_v35, %v3878_v42  ;;  %v3920_v35 = vpop.permute.xlu1 %2334 }
 0x3b8   : > { %v2280_v41 = vmax.f32 %v1991_v33, 0.0  ;;  %v2282_v54 = vmax.f32 %v2080_v51, 0.0 }
 0x3b9   : > { %v2281_v45 = vmax.f32 %v1993_v57, 0.0  ;;  %v2283_v46 = vmax.f32 %v2082_v60, 0.0  ;;  %v1996_v31 = vpop.f32.mrb[34].mxu0  ;;  %v2085_v19 = vpop.f32.mrb[34].mxu1 }
 0x3ba   : > { %v1997_v21 = vadd.f32 %v1996_v31, %v3876_v36  ;;  %v2086_v15 = vadd.f32 %v2085_v19, %v3876_v36  ;;  %v1998_v13 = vpop.f32.mrb[35].mxu0  ;;  %v2087_v50 = vpop.f32.mrb[35].mxu1  ;;  %v2337_v6 = vmul.f32 %v3888_v43, %v2280_v41  ;;  %v2339_v23 = vmul.f32 %v3888_v43, %v2282_v54 }
 0x3bb   : > { %v1999_v29 = vadd.f32 %v1998_v13, %v3876_v36  ;;  %v2088_v30 = vadd.f32 %v2087_v50, %v3876_v36  ;;  %v2338_v47 = vmul.f32 %v3888_v43, %v2281_v45  ;;  %v2340_v16 = vmul.f32 %v3888_v43, %v2283_v46 }
 0x3bc   : > { %v2288_v61 = vmax.f32 %v1997_v21, 0.0  ;;  %v2290_v14 = vmax.f32 %v2086_v15, 0.0 }
 0x3bd   : > { %v2289_v44 = vmax.f32 %v1999_v29, 0.0  ;;  %v2291_v8 = vmax.f32 %v2088_v30, 0.0  ;;  %v2002_v0 = vpop.f32.mrb[36].mxu0  ;;  %v2091_v9 = vpop.f32.mrb[36].mxu1  ;;  %v2469_v29 = vunpack.c.0.s8 %v3896_v4 }
 0x3be   : > { %v2003_v2 = vadd.f32 %v2002_v0, %v3880_v22  ;;  %v2092_v32 = vadd.f32 %v2091_v9, %v3880_v22  ;;  %v2004_v55 = vpop.f32.mrb[37].mxu0  ;;  %v2093_v27 = vpop.f32.mrb[37].mxu1  ;;  %v2345_v39 = vmul.f32 %v3894_v1, %v2288_v61  ;;  %v2347_v56 = vmul.f32 %v3894_v1, %v2290_v14 }
 0x3bf   : > { %v2005_v17 = vadd.f32 %v2004_v55, %v3880_v22  ;;  %v2094_v53 = vadd.f32 %v2093_v27, %v3880_v22  ;;  %v2346_v38 = vmul.f32 %v3894_v1, %v2289_v44  ;;  %v2348_v24 = vmul.f32 %v3894_v1, %v2291_v8 }
 0x3c0   : > { %v2296_v25 = vmax.f32 %v2003_v2, 0.0  ;;  %v2298_v11 = vmax.f32 %v2092_v32, 0.0  ;;  %v2369_v10 = vadd.f32 %v2345_v39, %v2337_v6  ;;  %v2387_v40 = vadd.f32 %v2347_v56, %v2339_v23 }
 0x3c1   : > { %v2297_v37 = vmax.f32 %v2005_v17, 0.0  ;;  %v2299_v28 = vmax.f32 %v2094_v53, 0.0  ;;  %v2008_v62 = vpop.f32.mrb[38].mxu0  ;;  %v2097_v7 = vpop.f32.mrb[38].mxu1  ;;  %v2378_v49 = vadd.f32 %v2346_v38, %v2338_v47  ;;  %v2396_v34 = vadd.f32 %v2348_v24, %v2340_v16 }
 0x3c2   : > { %v2353_v52 = vmul.f32 %v3900_v58, %v2296_v25  ;;  %v2355_v3 = vmul.f32 %v3900_v58, %v2298_v11  ;;  %v2009_v5 = vadd.f32 %v2008_v62, %v3882_v18  ;;  %v2098_v20 = vadd.f32 %v2097_v7, %v3882_v18  ;;  %v2010_v48 = vpop.f32.mrb[39].mxu0  ;;  %v2099_v12 = vpop.f32.mrb[39].mxu1 }
 0x3c3   : > { %v2354_v63 = vmul.f32 %v3900_v58, %v2297_v37  ;;  %v2356_v33 = vmul.f32 %v3900_v58, %v2299_v28  ;;  %v2011_v51 = vadd.f32 %v2010_v48, %v3882_v18  ;;  %v2100_v59 = vadd.f32 %v2099_v12, %v3882_v18 }
 0x3c4   : > { %v2304_v57 = vmax.f32 %v2009_v5, 0.0  ;;  %v2306_v60 = vmax.f32 %v2098_v20, 0.0  ;;  %v2370_v41 = vadd.f32 %v2369_v10, %v2353_v52  ;;  %v2388_v54 = vadd.f32 %v2387_v40, %v2355_v3 }
 0x3c5   : > { %v2305_v45 = vmax.f32 %v2011_v51, 0.0  ;;  %v2307_v46 = vmax.f32 %v2100_v59, 0.0  ;;  %v2379_v31 = vadd.f32 %v2378_v49, %v2354_v63  ;;  %v2397_v19 = vadd.f32 %v2396_v34, %v2356_v33 }
 0x3c6   : > { %v2361_v21 = vmul.f32 %v3920_v35, %v2304_v57  ;;  %v2363_v15 = vmul.f32 %v3920_v35, %v2306_v60  ;;  %v2168_v13 = vpop.f32.mrb[40].mxu0  ;;  %v2257_v50 = vpop.f32.mrb[40].mxu1 }
 0x3c7   : > { %v2362_v30 = vmul.f32 %v3920_v35, %v2305_v45  ;;  %v2364_v26 = vmul.f32 %v3920_v35, %v2307_v46  ;;  %v2169_v6 = vadd.f32 %v2168_v13, %v3878_v42  ;;  %v2258_v23 = vadd.f32 %v2257_v50, %v3878_v42  ;;  %v2170_v61 = vpop.f32.mrb[41].mxu0  ;;  %v2259_v14 = vpop.f32.mrb[41].mxu1 }
 0x3c8   : > { %v2371_v47 = vadd.f32 %v2370_v41, %v2361_v21  ;;  %v2389_v16 = vadd.f32 %v2388_v54, %v2363_v15  ;;  %v2171_v44 = vadd.f32 %v2170_v61, %v3878_v42  ;;  %v2260_v8 = vadd.f32 %v2259_v14, %v3878_v42 }
 0x3c9   : > { %v2380_v0 = vadd.f32 %v2379_v31, %v2362_v30  ;;  %v2398_v9 = vadd.f32 %v2397_v19, %v2364_v26  ;;  %v2284_v2 = vmax.f32 %v2169_v6, 0.0  ;;  %v2286_v32 = vmax.f32 %v2258_v23, 0.0 }
 0x3ca   : > { %v2372_v55 = vrot.slane %v2371_v47, 4  ;;  %v2390_v27 = vrot.slane %v2389_v16, 4  ;;  %v2285_v39 = vmax.f32 %v2171_v44, 0.0  ;;  %v2287_v56 = vmax.f32 %v2260_v8, 0.0  ;;  %v2174_v17 = vpop.f32.mrb[42].mxu0  ;;  %v2263_v53 = vpop.f32.mrb[42].mxu1 }
 0x3cb   : > { %v2381_v38 = vrot.slane %v2380_v0, 4  ;;  %v2399_v24 = vrot.slane %v2398_v9, 4  ;;  %v2341_v25 = vmul.f32 %v3888_v43, %v2284_v2  ;;  %v2343_v11 = vmul.f32 %v3888_v43, %v2286_v32  ;;  %v2176_v10 = vpop.f32.mrb[43].mxu0  ;;  %v2265_v40 = vpop.f32.mrb[43].mxu1 }
 0x3cc   : > { %v2373_v37 = vadd.f32 %v2372_v55, %v2371_v47  ;;  %v2391_v42 = vadd.f32 %v2390_v27, %v2389_v16  ;;  %v2342_v28 = vmul.f32 %v3888_v43, %v2285_v39  ;;  %v2344_v62 = vmul.f32 %v3888_v43, %v2287_v56 }
 0x3cd   : > { %v2382_v7 = vadd.f32 %v2381_v38, %v2380_v0  ;;  %v3935_v49 = vadd.f32 %v2399_v24, %v2398_v9  ;;  %v2175_v34 = vadd.f32 %v2174_v17, %v3876_v36  ;;  %v2264_v52 = vadd.f32 %v2263_v53, %v3876_v36 }
 0x3ce   : > { %v2177_v3 = vadd.f32 %v2176_v10, %v3876_v36  ;;  %v2266_v5 = vadd.f32 %v2265_v40, %v3876_v36  ;;  %v2180_v20 = vpop.f32.mrb[44].mxu0  ;;  %v2269_v48 = vpop.f32.mrb[44].mxu1  ;;  %v2374_v12 = vrot.slane %v2373_v37, 2  ;;  %v2392_v63 = vrot.slane %v2391_v42, 2 }
 0x3cf   : > { %v2292_v33 = vmax.f32 %v2175_v34, 0.0  ;;  %v2294_v51 = vmax.f32 %v2264_v52, 0.0  ;;  %v2181_v59 = vadd.f32 %v2180_v20, %v3880_v22  ;;  %v2270_v43 = vadd.f32 %v2269_v48, %v3880_v22  ;;  %v2182_v57 = vpop.f32.mrb[45].mxu0  ;;  %v2271_v60 = vpop.f32.mrb[45].mxu1 }
 0x3d0   : > { %v2293_v41 = vmax.f32 %v2177_v3, 0.0  ;;  %v2295_v54 = vmax.f32 %v2266_v5, 0.0  ;;  %v2183_v45 = vadd.f32 %v2182_v57, %v3880_v22  ;;  %v2272_v46 = vadd.f32 %v2271_v60, %v3880_v22 }
 0x3d1   : > { %v2349_v36 = vmul.f32 %v3894_v1, %v2292_v33  ;;  %v2351_v31 = vmul.f32 %v3894_v1, %v2294_v51  ;;  %v2300_v19 = vmax.f32 %v2181_v59, 0.0  ;;  %v2302_v21 = vmax.f32 %v2270_v43, 0.0 }
 0x3d2   : > { %v2350_v15 = vmul.f32 %v3894_v1, %v2293_v41  ;;  %v2352_v13 = vmul.f32 %v3894_v1, %v2295_v54  ;;  %v2301_v50 = vmax.f32 %v2183_v45, 0.0  ;;  %v2303_v30 = vmax.f32 %v2272_v46, 0.0  ;;  %v2186_v26 = vpop.f32.mrb[46].mxu0  ;;  %v2275_v6 = vpop.f32.mrb[46].mxu1 }
 0x3d3   : > { %v2405_v23 = vadd.f32 %v2349_v36, %v2341_v25  ;;  %v2423_v61 = vadd.f32 %v2351_v31, %v2343_v11  ;;  %v2357_v14 = vmul.f32 %v3900_v58, %v2300_v19  ;;  %v2359_v22 = vmul.f32 %v3900_v58, %v2302_v21  ;;  %v2188_v47 = vpop.f32.mrb[47].mxu0  ;;  %v2277_v16 = vpop.f32.mrb[47].mxu1 }
 0x3d4   : > { %v2414_v44 = vadd.f32 %v2350_v15, %v2342_v28  ;;  %v2432_v8 = vadd.f32 %v2352_v13, %v2344_v62  ;;  %v2358_v0 = vmul.f32 %v3900_v58, %v2301_v50  ;;  %v2360_v9 = vmul.f32 %v3900_v58, %v2303_v30 }
 0x3d5   : > { %v2406_v2 = vadd.f32 %v2405_v23, %v2357_v14  ;;  %v2424_v1 = vadd.f32 %v2423_v61, %v2359_v22  ;;  %v2187_v32 = vadd.f32 %v2186_v26, %v3882_v18  ;;  %v2276_v55 = vadd.f32 %v2275_v6, %v3882_v18 }
 0x3d6   : > { %v2415_v27 = vadd.f32 %v2414_v44, %v2358_v0  ;;  %v2433_v39 = vadd.f32 %v2432_v8, %v2360_v9  ;;  %v2189_v56 = vadd.f32 %v2188_v47, %v3882_v18  ;;  %v2278_v17 = vadd.f32 %v2277_v16, %v3882_v18  ;;  %v2445_v18 = vpop.permute.xlu0 %2444 }
 0x3d7   : > { %v2308_v53 = vmax.f32 %v2187_v32, 0.0  ;;  %v2310_v38 = vmax.f32 %v2276_v55, 0.0  ;;  %v2375_v24 = vadd.f32 %v2374_v12, %v2373_v37  ;;  %v2383_v25 = vrot.slane %v2382_v7, 2 }
 0x3d8   : > { %v2309_v11 = vmax.f32 %v2189_v56, 0.0  ;;  %v2311_v10 = vmax.f32 %v2278_v17, 0.0  ;;  %v2393_v40 = vadd.f32 %v2392_v63, %v2391_v42  ;;  %v2401_v58 = vrot.slane %v3935_v49, 2 }
 0x3d9   : > { %v2365_v28 = vmul.f32 %v3920_v35, %v2308_v53  ;;  %v2367_v62 = vmul.f32 %v3920_v35, %v2310_v38  ;;  %v2376_v34 = vrot.slane %v2375_v24, 1  ;;  %v2384_v52 = vadd.f32 %v2383_v25, %v2382_v7 }
 0x3da   : > { %v2366_v3 = vmul.f32 %v3920_v35, %v2309_v11  ;;  %v2368_v5 = vmul.f32 %v3920_v35, %v2311_v10  ;;  %v2394_v20 = vrot.slane %v2393_v40, 1  ;;  %v2402_v37 = vadd.f32 %v2401_v58, %v3935_v49  ;;  %v4054_v49 = vld [vmem:[#allocation14_spill] sm:$0xff] }
 0x3db   : > { %v2407_v48 = vadd.f32 %v2406_v2, %v2365_v28  ;;  %v2425_v12 = vadd.f32 %v2424_v1, %v2367_v62  ;;  %v2377_v33 = vadd.f32 %v2376_v34, %v2375_v24  ;;  %v2385_v42 = vrot.slane %v2384_v52, 1 }
 0x3dc   : > { %v2416_v63 = vadd.f32 %v2415_v27, %v2366_v3  ;;  %v2434_v51 = vadd.f32 %v2433_v39, %v2368_v5  ;;  %v2395_v59 = vadd.f32 %v2394_v20, %v2393_v40  ;;  %v2403_v43 = vrot.slane %v2402_v37, 1 }
 0x3dd   : > { %v2408_v57 = vrot.slane %v2407_v48, 4  ;;  %v2426_v60 = vrot.slane %v2425_v12, 4  ;;  %v2386_v41 = vadd.f32 %v2385_v42, %v2384_v52  ;;  %v2447_v7 = vadd.f32 %v2445_v18, %v2377_v33 }
 0x3de   : > { %v2417_v54 = vrot.slane %v2416_v63, 4  ;;  %v2435_v45 = vrot.slane %v2434_v51, 4  ;;  %v2404_v46 = vadd.f32 %v2403_v43, %v2402_v37  ;;  %v2449_v35 = vadd.f32 %v2445_v18, %v2395_v59 }
 0x3df   : > { %v2409_v36 = vadd.f32 %v2408_v57, %v2407_v48  ;;  %v2427_v31 = vadd.f32 %v2426_v60, %v2425_v12  ;;  %v2448_v19 = vadd.f32 %v2445_v18, %v2386_v41  ;;  %v2472_v21 = vsub.s32 %v2469_v29, %v4054_v49 }
 0x3e0   : > { %v2418_v15 = vadd.f32 %v2417_v54, %v2416_v63  ;;  %v2436_v13 = vadd.f32 %v2435_v45, %v2434_v51  ;;  %v2450_v50 = vadd.f32 %v2445_v18, %v2404_v46 }
 0x3e1   : > { %v2410_v30 = vrot.slane %v2409_v36, 2  ;;  %v2428_v26 = vrot.slane %v2427_v31, 2  ;;  %v2463_v6 = vcombine.low %v2447_v7, %v2448_v19 }
 0x3e2   : > { %v2419_v23 = vrot.slane %v2418_v15, 2  ;;  %v2437_v61 = vrot.slane %v2436_v13, 2  ;;  %v2464_v14 = vcombine.low %v2449_v35, %v2450_v50 }
 0x3e3   : > { %v2411_v22 = vadd.f32 %v2410_v30, %v2409_v36  ;;  %v2429_v47 = vadd.f32 %v2428_v26, %v2427_v31  ;;  %v2473_v16 = vrot.slane %v2463_v6, %v2472_v21 }
 0x3e4   : > { %v2420_v44 = vadd.f32 %v2419_v23, %v2418_v15  ;;  %v2438_v8 = vadd.f32 %v2437_v61, %v2436_v13  ;;  %v2480_v0 = vrot.slane %v2464_v14, %v2472_v21 }
 0x3e5   : > { %v2412_v9 = vrot.slane %v2411_v22, 1  ;;  %v2430_v2 = vrot.slane %v2429_v47, 1 }
 0x3e6   : > { %v2421_v4 = vrot.slane %v2420_v44, 1  ;;  %v2439_v29 = vrot.slane %v2438_v8, 1  ;;  %v2495_v1 = vcombine.low %v2473_v16, %v2480_v0 }
 0x3e7   : > { %v2413_v32 = vadd.f32 %v2412_v9, %v2411_v22  ;;  %v2431_v55 = vadd.f32 %v2430_v2, %v2429_v47 }
 0x3e8   : > { %v2422_v27 = vadd.f32 %v2421_v4, %v2420_v44  ;;  %v2440_v39 = vadd.f32 %v2439_v29, %v2438_v8  ;;  %v2503_v58 = vrot.slane %v2495_v1, %v2472_v21 }
 0x3e9   : > { %v2451_v56 = vadd.f32 %v2445_v18, %v2413_v32  ;;  %v2453_v17 = vadd.f32 %v2445_v18, %v2431_v55 }
 0x3ea   : > { %v2452_v53 = vadd.f32 %v2445_v18, %v2422_v27  ;;  %v2454_v38 = vadd.f32 %v2445_v18, %v2440_v39 }
 0x3ec   : > { %v2465_v24 = vcombine.low %v2451_v56, %v2452_v53  ;;  %v2466_v25 = vcombine.low %v2453_v17, %v2454_v38 }
 0x3ee   : > { %v2487_v11 = vrot.slane %v2465_v24, %v2472_v21  ;;  %v2494_v10 = vrot.slane %v2466_v25, %v2472_v21 }
 0x3f0   : > { %v2496_v40 = vcombine.low %v2487_v11, %v2494_v10 }
 0x3f2   : > { %v2510_v28 = vrot.slane %v2496_v40, %v2472_v21 }
 0x3f4   : > { %v2511_v62 = vcombine.low %v2503_v58, %v2510_v28 }
 0x3f6   : > { %2513 = vst [vmem:[%s246_s5] sm:$0xff] %v2511_v62 }
 0x3f7   : > { %3010 = shalt.err (!%p3007_p13)
}
 0x3f8   : > { %s3011_s23 = scalar_lea.hbm %s3971_s8, 128  ;;  %s3015_s6 = scalar_lea.hbm %s4019_s4, 256 }
 0x3f9   : > { %p3012_p2 = scmp.ne.s32.totalorder %s3971_s8, %s3011_s23  ;;  %p3016_p0 = scmp.lt.u32.totalorder %s3971_s8, %s4019_s4 }
 0x3fa   : > { %p3017_p3 = scmp.lt.u32.totalorder %s3015_s6, %s3011_s23  ;;  %p3019_p9 = scmp.lt.u32.totalorder %s3011_s23, %s3971_s8 }
 0x3fb   : > { %p3013_p6 = pnand %p3012_p2, %p4055_p10 }
 0x3fc   : > { %p3018_p8 = por %p3017_p3, %p3016_p0 }
 0x3fd   : > { %p3014_p12 = pneg %p3013_p6 }
 0x3fe   : > { %p3020_p1 = por %p3019_p9, %p3018_p8 }
 0x400   : > { %p3021_p4 = pnand %p3020_p1, %p3014_p12 }
 0x402   : > { %3024 = shalt.err (!%p3021_p4)
}
 0x403   : > { %2855 = dma.vmem_to_hbm [thread:$0]  (%p4055_p10), %s3973_s20, 128, %s3971_s8, %s2515_s11  }
 0x404 PF: > { %s2541_s12 = sand.u32 1, %s3055_s15   ;;  %p4056_p7 = scmp.ne.s32.totalorder %s4035_s28, 0 }
 0x405   : > { %p4057_p5 = scmp.ge.s32.totalorder %s3067_s18, 2  ;;  %s2542_s13 = scalar_lea.sflag [#allocation4], %s2541_s12 }
 0x407   : > { %p2866_p11 = pnand %p4057_p5, %p4056_p7 }
 0x409   : > { %3050 = dma.done.wait (!%p2866_p11), %s2542_s13, 128  }
 0x40a   : > { %3052 = vsyncadd (!%p2866_p11), %s2542_s13, 4294967168  ;;  %p18_p13 = scmp.ge.s32.totalorder %s3135_s21, 4   ;;  %s4058_s15 = smov %s3059_s16 }
 0x40b   : > { %s4059_s16 = smov %s3063_s17  ;;  %s4060_s17 = smov %s3147_s24 }
 0x40c   : > { %s4061_s18 = smov %s3135_s21  ;;  %20 = sbr.rel (!%p18_p13) target bundleno = 6 (0x6), region = 92 }
 0x413   :  { %2547 = vsyncpa [#allocation3], 1 }
 0x414   :  { %2549 = vsyncpa [#allocation3 + $0x1], 1 }
 0x415   :  { %2550 = vsyncpa [#allocation6], 1 }
 0x416   :  { %2551 = vsyncpa [#allocation4], 1 }
 0x417   :  { %2553 = vsyncpa [#allocation4 + $0x1], 1 }

</bundles_post_ra>
